<compile_context>
chip_gen: v7x
topology: tpu7x:2x2x1
jax: 0.10.0
libtpu: 0.0.40
codegen_flags: <defaults>
</compile_context>

<pallas_src>
import math

import jax
import jax.numpy as jnp
from jax import lax
from jax.experimental import pallas as pl
from jax.experimental.pallas import tpu as pltpu

D_MODEL = 170
NHEAD = 5
HEAD_DIM = D_MODEL // NHEAD        # 34

HEAD_PAD = 128                      # per-head lane window (tile-aligned)
OUT_PAD = 256                       # lane-dense context-output width
Q_OFF = 0
K_OFF = NHEAD * HEAD_PAD            # 640
V_OFF = 2 * NHEAD * HEAD_PAD        # 1280
PROJ_W = 3 * NHEAD * HEAD_PAD       # 1920 fused projection width


def _mha_kernel(x_ref, wproj_ref, wdh_ref, bd_ref, out_ref, attn_ref, proj_ref):
    TB, H, S, _ = attn_ref.shape
    HP = HEAD_PAD

    # Single fused projection (Q | K+content-bias | V) for every row in the
    # block: one MXU pass, bf16 operands, f32 accumulation, bf16 scratch.
    proj_ref[...] = jnp.dot(
        x_ref[...], wproj_ref[...], preferred_element_type=jnp.float32
    ).astype(proj_ref.dtype)

    bias = bd_ref[...]                                           # [1, OUT_PAD] f32
    # Column HEAD_DIM of each Q head-window is forced to 1.0 so the
    # content-bias column folded into K at the same offset contributes
    # `+ content_bias[key_j, h]` to the scores via the same QK^T matmul.
    ones_col = lax.broadcasted_iota(jnp.int32, (S, HP), 1) == HEAD_DIM

    @pl.loop(0, TB, unroll=TB <= 4)
    def _batch(b):
        r0 = b * S
        if S % 8 == 0 and not isinstance(r0, int):
            r0 = pl.multiple_of(r0, 8)
        rows = pl.ds(r0, S)

        acc = None                                               # running f32 accumulator
        for h in range(H):                                       # H=5, static unroll
            q_lo = Q_OFF + h * HP
            k_lo = K_OFF + h * HP
            v_lo = V_OFF + h * HP
            qh = proj_ref[rows, q_lo:q_lo + HP]                  # [S, HP] bf16
            kh = proj_ref[rows, k_lo:k_lo + HP]                  # [S, HP] bf16
            vh = proj_ref[rows, v_lo:v_lo + HP]                  # [S, HP] bf16
            qh = jnp.where(ones_col, jnp.ones_like(qh), qh)

            # scores[i, j] = <mixed_q_i, k_j> / sqrt(hd) + content_bias[j, h]
            # (gate & 1/sqrt(hd) folded into Wq; bias folded into K column 34;
            #  contraction on dim 1 of both operands -> no explicit transpose)
            s = lax.dot_general(qh, kh, (((1,), (1,)), ((), ())),
                                preferred_element_type=jnp.float32)   # [S, S]
            s = s - jnp.max(s, axis=-1, keepdims=True)
            p = jnp.exp(s)
            probs = p / jnp.sum(p, axis=-1, keepdims=True)       # exact softmax
            attn_ref[b, h] = probs

            oh = jnp.dot(probs.astype(jnp.bfloat16), vh,
                         preferred_element_type=jnp.float32)     # [S, HP]
            part = jnp.dot(oh.astype(jnp.bfloat16), wdh_ref[h],
                           preferred_element_type=jnp.float32)   # [S, OUT_PAD]
            acc = part if acc is None else acc + part

        out_ref[rows, :] = (acc + bias).astype(out_ref.dtype)


def prepare_params(wq, wk, wv, wcb, mixing, wd, bd):
    """One-time parameter prep (hoisted out of the per-call path):
    transpose to [in, out], fold mixing & 1/sqrt(hd) into Wq, fuse Wq/Wk/Wv and
    the content-bias weight into one [D, 3*H*128] matrix with tile-aligned
    per-head windows, split & pad the dense weight per head, cast to bf16."""
    H, hd, D, HP = NHEAD, HEAD_DIM, D_MODEL, HEAD_PAD
    inv_sqrt_hd = 1.0 / math.sqrt(hd)
    gate = (mixing * inv_sqrt_hd).reshape(-1)                   # [D], col h*hd+j
    wq_t = wq.T * gate[None, :]                                 # [D, D] (in, out)
    wk_t = wk.T
    wv_t = wv.T
    wcb_t = wcb.T                                               # [D, H]

    w_all = jnp.zeros((D, PROJ_W), jnp.float32)
    for h in range(H):
        c = h * hd
        w_all = w_all.at[:, Q_OFF + h * HP: Q_OFF + h * HP + hd].set(wq_t[:, c:c + hd])
        w_all = w_all.at[:, K_OFF + h * HP: K_OFF + h * HP + hd].set(wk_t[:, c:c + hd])
        w_all = w_all.at[:, K_OFF + h * HP + hd].set(wcb_t[:, h])   # content bias col
        w_all = w_all.at[:, V_OFF + h * HP: V_OFF + h * HP + hd].set(wv_t[:, c:c + hd])

    wd_t = wd.T                                                 # [D, D] (in, out)
    wdh = jnp.zeros((H, HP, OUT_PAD), jnp.float32)
    for h in range(H):
        wdh = wdh.at[h, :hd, :D].set(wd_t[h * hd:(h + 1) * hd, :])

    bd_pad = jnp.zeros((1, OUT_PAD), jnp.float32).at[0, :D].set(bd)

    return dict(w_all=w_all.astype(jnp.bfloat16),
                wdh=wdh.astype(jnp.bfloat16),
                bd=bd_pad)


def _vmem_estimate(tb, S):
    rows = tb * S
    return (2 * rows * D_MODEL * 2                 # x block (bf16, dbl-buffered)
            + 2 * rows * OUT_PAD * 4               # context out block (f32)
            + 2 * tb * NHEAD * S * S * 4           # attention probs out block
            + rows * PROJ_W * 2                    # projection scratch (bf16)
            + 2 * (D_MODEL * PROJ_W + NHEAD * HEAD_PAD * OUT_PAD) * 2
            + 2 * OUT_PAD * 4)


def _pick_batch_block(B, S, target_rows=512, vmem_budget=24 << 20):
    """Pick TB (batches per grid step) such that the (TB*S, D) BlockSpec is
    lowering-legal (rows % 8 == 0 unless grid == 1), the grid has >= 2 steps
    when possible (two TensorCores on v7x), rows are near target_rows (MXU M
    occupancy / per-step overhead amortization), and VMEM stays in budget."""
    cands = []
    for tb in range(1, B + 1):
        if B % tb:
            continue
        grid = B // tb
        rows = tb * S
        if grid > 1 and rows % 8 != 0:
            continue                       # (8,128) rule on the row BlockSpec
        fits = _vmem_estimate(tb, S) <= vmem_budget
        multi = grid >= 2 or B == 1
        cands.append(((not fits, not multi, abs(rows - target_rows), tb), tb))
    # tb == B (grid == 1, block == full array) is always lowering-legal.
    return min(cands)[1]


@jax.jit
def multi_head_attention(x, params):
    B, S, D = x.shape
    assert D == D_MODEL
    TB = _pick_batch_block(B, S)
    rows = TB * S
    x2d = x.reshape(B * S, D).astype(jnp.bfloat16)

    # NOTE: weight blocks are grid-invariant (no re-DMA); their default double
    # buffering costs < 1 MiB here so pipeline_mode tweaks are not needed.
    out_pad, attn = pl.pallas_call(
        _mha_kernel,
        out_shape=(
            jax.ShapeDtypeStruct((B * S, OUT_PAD), jnp.float32),     # attn_output (padded)
            jax.ShapeDtypeStruct((B, NHEAD, S, S), jnp.float32),     # attn_weights
        ),
        grid_spec=pltpu.PrefetchScalarGridSpec(
            num_scalar_prefetch=0,
            grid=(B // TB,),
            in_specs=[
                pl.BlockSpec((rows, D_MODEL), lambda i: (i, 0)),         # x rows
                pl.BlockSpec((D_MODEL, PROJ_W), lambda i: (0, 0)),       # fused Wq|Wk+cb|Wv
                pl.BlockSpec((NHEAD, HEAD_PAD, OUT_PAD), lambda i: (0, 0, 0)),  # dense per-head
                pl.BlockSpec((1, OUT_PAD), lambda i: (0, 0)),            # dense bias
            ],
            out_specs=[
                pl.BlockSpec((rows, OUT_PAD), lambda i: (i, 0)),
                pl.BlockSpec((TB, NHEAD, S, S), lambda i: (i, 0, 0, 0)),
            ],
            scratch_shapes=[pltpu.VMEM((rows, PROJ_W), jnp.bfloat16)],   # fused projection
        ),
        compiler_params=pltpu.CompilerParams(
            dimension_semantics=("parallel",)),
    )(x2d, params["w_all"], params["wdh"], params["bd"])

    out = out_pad[:, :D_MODEL].reshape(B, S, D_MODEL)
    return out, attn


def _reference(x, wq, wk, wv, wcb, mixing, wd, bd):
    """Pure-JAX f32 mirror of the PyTorch forward (eval mode)."""
    B, S, D = x.shape
    H, hd = NHEAD, HEAD_DIM
    q = (x @ wq.T).reshape(B, S, H, hd).transpose(0, 2, 1, 3)
    k = (x @ wk.T).reshape(B, S, H, hd).transpose(0, 2, 1, 3)
    v = (x @ wv.T).reshape(B, S, H, hd).transpose(0, 2, 1, 3)
    mixed_q = q * mixing[None, :, None, :]
    scores = jnp.einsum("bhid,bhjd->bhij", mixed_q, k) / math.sqrt(hd)
    cb = (x @ wcb.T).transpose(0, 2, 1)[:, :, None, :]          # [B, H, 1, S]
    scores = scores + cb
    w = jax.nn.softmax(scores, axis=-1)
    attn = jnp.einsum("bhij,bhjd->bhid", w, v)
    attn = attn.transpose(0, 2, 1, 3).reshape(B, S, D)
    out = attn @ wd.T + bd
    return out, w


if __name__ == "__main__":
    key = jax.random.PRNGKey(0)
    ks = jax.random.split(key, 8)
    B, S = 2, 8

    x = jax.random.normal(ks[0], (B, S, D_MODEL), dtype=jnp.float32)
    # Deterministic synthetic parameters (not a checkpoint).
    wq = jax.random.normal(ks[1], (D_MODEL, D_MODEL), jnp.float32) * 0.05
    wk = jax.random.normal(ks[2], (D_MODEL, D_MODEL), jnp.float32) * 0.05
    wv = jax.random.normal(ks[3], (D_MODEL, D_MODEL), jnp.float32) * 0.05
    wcb = jax.random.normal(ks[4], (NHEAD, D_MODEL), jnp.float32) * 0.05
    mixing = jax.random.normal(ks[5], (NHEAD, HEAD_DIM), jnp.float32) * 0.2  # UNIFORM init
    wd = jax.random.normal(ks[6], (D_MODEL, D_MODEL), jnp.float32) * 0.05
    bd = jax.random.normal(ks[7], (D_MODEL,), jnp.float32) * 0.05

    params = prepare_params(wq, wk, wv, wcb, mixing, wd, bd)

    out, attn_w = multi_head_attention(x, params)
    out = jax.block_until_ready(out)
    attn_w = jax.block_until_ready(attn_w)

    ref_out, ref_w = _reference(x, wq, wk, wv, wcb, mixing, wd, bd)
    # bf16 MXU operands => slightly relaxed tolerance vs the f32 reference.
    assert jnp.allclose(out, ref_out, atol=2e-2, rtol=2e-2), \
        float(jnp.max(jnp.abs(out - ref_out)))
    assert jnp.allclose(attn_w, ref_w, atol=2e-2, rtol=2e-2), \
        float(jnp.max(jnp.abs(attn_w - ref_w)))

    print("KERNEL_OK")
</pallas_src>

<mosaic_0001>
module attributes {stable_mosaic.version = 11 : i64} {
  func.func @_mha_kernel(%arg0: i32, %arg1: memref<8x170xbf16, #tpu.memory_space<vmem>>, %arg2: memref<170x1920xbf16, #tpu.memory_space<vmem>>, %arg3: memref<5x128x256xbf16, #tpu.memory_space<vmem>>, %arg4: memref<1x256xf32, #tpu.memory_space<vmem>>, %arg5: memref<8x256xf32, #tpu.memory_space<vmem>>, %arg6: memref<1x5x8x8xf32, #tpu.memory_space<vmem>>, %arg7: memref<8x1920xbf16, #tpu.memory_space<vmem>>) attributes {dimension_semantics = [#tpu.dimension_semantics<parallel>], iteration_bounds = array<i64: 2>, scalar_prefetch = 0 : i64, scratch_operands = 1 : i64, tpu.core_type = #tpu.core_type<tc>, window_params = [{transform_indices = @transform_0, window_bounds = array<i64: 8, 170>}, {pipeline_mode = #tpu.pipeline_mode<synchronous>, transform_indices = @transform_1, window_bounds = array<i64: 170, 1920>}, {pipeline_mode = #tpu.pipeline_mode<synchronous>, transform_indices = @transform_2, window_bounds = array<i64: 5, 128, 256>}, {pipeline_mode = #tpu.pipeline_mode<synchronous>, transform_indices = @transform_3, window_bounds = array<i64: 1, 256>}, {transform_indices = @transform_4, window_bounds = array<i64: 8, 256>}, {transform_indices = @transform_5, window_bounds = array<i64: 1, 5, 8, 8>}]} {
    %c0 = arith.constant 0 : index
    %c0_0 = arith.constant 0 : index
    %0 = vector.load %arg1[%c0, %c0_0] : memref<8x170xbf16, #tpu.memory_space<vmem>>, vector<8x170xbf16>
    %c0_1 = arith.constant 0 : index
    %c0_2 = arith.constant 0 : index
    %1 = vector.load %arg2[%c0_1, %c0_2] : memref<170x1920xbf16, #tpu.memory_space<vmem>>, vector<170x1920xbf16>
    %cst = arith.constant dense<0.000000e+00> : vector<8x1920xf32>
    %2 = tpu.matmul %0, %1, %cst {dimension_numbers = #tpu.dot_dimension_numbers<[1], [0], [0], [1], [0, 0, 1, 1], [], []>} : vector<8x170xbf16>, vector<170x1920xbf16>, vector<8x1920xf32> -> vector<8x1920xf32>
    %3 = arith.truncf %2 : vector<8x1920xf32> to vector<8x1920xbf16>
    %c0_3 = arith.constant 0 : index
    %c0_4 = arith.constant 0 : index
    %4 = vector.load %arg7[%c0_3, %c0_4] : memref<8x1920xbf16, #tpu.memory_space<vmem>>, vector<8x1920xbf16>
    tpu.vector_store %arg7[%c0_3, %c0_4], %3 {strides = array<i32>} : memref<8x1920xbf16, #tpu.memory_space<vmem>>, vector<8x1920xbf16>,
    %c0_5 = arith.constant 0 : index
    %c0_6 = arith.constant 0 : index
    %5 = vector.load %arg4[%c0_5, %c0_6] : memref<1x256xf32, #tpu.memory_space<vmem>>, vector<1x256xf32>
    %6 = tpu.iota {dimensions = array<i32: 1>} : vector<8x128xi32>
    %c34_i32 = arith.constant 34 : i32
    %7 = vector.broadcast %c34_i32 : i32 to vector<8x128xi32>
    %8 = arith.cmpi eq, %6, %7 : vector<8x128xi32>
    %c0_i32 = arith.constant 0 : i32
    %c1_i32 = arith.constant 1 : i32
    %9 = arith.muli %c0_i32, %c1_i32 : i32
    %c0_i32_7 = arith.constant 0 : i32
    %10 = arith.addi %c0_i32_7, %9 : i32
    %c8_i32 = arith.constant 8 : i32
    %11 = arith.muli %10, %c8_i32 : i32
    %12 = tpu.assume_multiple %11, 8 : i32
    %13 = arith.index_cast %12 : i32 to index
    %c0_8 = arith.constant 0 : index
    %14 = vector.load %arg7[%13, %c0_8] : memref<8x1920xbf16, #tpu.memory_space<vmem>>, vector<8x128xbf16>
    %15 = arith.index_cast %12 : i32 to index
    %c640 = arith.constant 640 : index
    %16 = vector.load %arg7[%15, %c640] : memref<8x1920xbf16, #tpu.memory_space<vmem>>, vector<8x128xbf16>
    %17 = arith.index_cast %12 : i32 to index
    %c1280 = arith.constant 1280 : index
    %18 = vector.load %arg7[%17, %c1280] : memref<8x1920xbf16, #tpu.memory_space<vmem>>, vector<8x128xbf16>
    %cst_9 = arith.constant 1.000000e+00 : bf16
    %19 = vector.broadcast %cst_9 : bf16 to vector<8x128xbf16>
    %20 = arith.select %8, %19, %14 : vector<8x128xi1>, vector<8x128xbf16>
    %cst_10 = arith.constant dense<0.000000e+00> : vector<8x8xf32>
    %21 = tpu.matmul %20, %16, %cst_10 {dimension_numbers = #tpu.dot_dimension_numbers<[1], [1], [0], [0], [0, 0, 1, 0], [], []>} : vector<8x128xbf16>, vector<8x128xbf16>, vector<8x8xf32> -> vector<8x8xf32>
    %cst_11 = arith.constant dense<0xFF800000> : vector<8xf32>
    %22 = vector.multi_reduction <maximumf>, %21, %cst_11 [1] : vector<8x8xf32> to vector<8xf32>
    %23 = vector.shape_cast %22 : vector<8xf32> to vector<8x1xf32>
    %24 = vector.broadcast %23 : vector<8x1xf32> to vector<8x8xf32>
    %25 = arith.subf %21, %24 : vector<8x8xf32>
    %26 = math.exp %25 : vector<8x8xf32>
    %cst_12 = arith.constant dense<0.000000e+00> : vector<8xf32>
    %27 = vector.multi_reduction <add>, %26, %cst_12 [1] : vector<8x8xf32> to vector<8xf32>
    %28 = vector.shape_cast %27 : vector<8xf32> to vector<8x1xf32>
    %29 = vector.broadcast %28 : vector<8x1xf32> to vector<8x8xf32>
    %30 = arith.divf %26, %29 : vector<8x8xf32>
    %31 = arith.index_cast %10 : i32 to index
    %c0_13 = arith.constant 0 : index
    %c0_14 = arith.constant 0 : index
    %c0_15 = arith.constant 0 : index
    %32 = vector.load %arg6[%31, %c0_13, %c0_14, %c0_15] : memref<1x5x8x8xf32, #tpu.memory_space<vmem>>, vector<1x1x8x8xf32>
    %33 = vector.shape_cast %32 : vector<1x1x8x8xf32> to vector<8x8xf32>
    %34 = vector.shape_cast %30 : vector<8x8xf32> to vector<1x1x8x8xf32>
    tpu.vector_store %arg6[%31, %c0_13, %c0_14, %c0_15], %34 {strides = array<i32>} : memref<1x5x8x8xf32, #tpu.memory_space<vmem>>, vector<1x1x8x8xf32>,
    %35 = arith.truncf %30 : vector<8x8xf32> to vector<8x8xbf16>
    %cst_16 = arith.constant dense<0.000000e+00> : vector<8x128xf32>
    %36 = tpu.matmul %35, %18, %cst_16 {dimension_numbers = #tpu.dot_dimension_numbers<[1], [0], [0], [1], [0, 0, 1, 1], [], []>} : vector<8x8xbf16>, vector<8x128xbf16>, vector<8x128xf32> -> vector<8x128xf32>
    %37 = arith.truncf %36 : vector<8x128xf32> to vector<8x128xbf16>
    %c0_17 = arith.constant 0 : index
    %c0_18 = arith.constant 0 : index
    %c0_19 = arith.constant 0 : index
    %38 = vector.load %arg3[%c0_17, %c0_18, %c0_19] : memref<5x128x256xbf16, #tpu.memory_space<vmem>>, vector<1x128x256xbf16>
    %39 = vector.shape_cast %38 : vector<1x128x256xbf16> to vector<128x256xbf16>
    %cst_20 = arith.constant dense<0.000000e+00> : vector<8x256xf32>
    %40 = tpu.matmul %37, %39, %cst_20 {dimension_numbers = #tpu.dot_dimension_numbers<[1], [0], [0], [1], [0, 0, 1, 1], [], []>} : vector<8x128xbf16>, vector<128x256xbf16>, vector<8x256xf32> -> vector<8x256xf32>
    %41 = arith.index_cast %12 : i32 to index
    %c128 = arith.constant 128 : index
    %42 = vector.load %arg7[%41, %c128] : memref<8x1920xbf16, #tpu.memory_space<vmem>>, vector<8x128xbf16>
    %43 = arith.index_cast %12 : i32 to index
    %c768 = arith.constant 768 : index
    %44 = vector.load %arg7[%43, %c768] : memref<8x1920xbf16, #tpu.memory_space<vmem>>, vector<8x128xbf16>
    %45 = arith.index_cast %12 : i32 to index
    %c1408 = arith.constant 1408 : index
    %46 = vector.load %arg7[%45, %c1408] : memref<8x1920xbf16, #tpu.memory_space<vmem>>, vector<8x128xbf16>
    %cst_21 = arith.constant 1.000000e+00 : bf16
    %47 = vector.broadcast %cst_21 : bf16 to vector<8x128xbf16>
    %48 = arith.select %8, %47, %42 : vector<8x128xi1>, vector<8x128xbf16>
    %cst_22 = arith.constant dense<0.000000e+00> : vector<8x8xf32>
    %49 = tpu.matmul %48, %44, %cst_22 {dimension_numbers = #tpu.dot_dimension_numbers<[1], [1], [0], [0], [0, 0, 1, 0], [], []>} : vector<8x128xbf16>, vector<8x128xbf16>, vector<8x8xf32> -> vector<8x8xf32>
    %cst_23 = arith.constant dense<0xFF800000> : vector<8xf32>
    %50 = vector.multi_reduction <maximumf>, %49, %cst_23 [1] : vector<8x8xf32> to vector<8xf32>
    %51 = vector.shape_cast %50 : vector<8xf32> to vector<8x1xf32>
    %52 = vector.broadcast %51 : vector<8x1xf32> to vector<8x8xf32>
    %53 = arith.subf %49, %52 : vector<8x8xf32>
    %54 = math.exp %53 : vector<8x8xf32>
    %cst_24 = arith.constant dense<0.000000e+00> : vector<8xf32>
    %55 = vector.multi_reduction <add>, %54, %cst_24 [1] : vector<8x8xf32> to vector<8xf32>
    %56 = vector.shape_cast %55 : vector<8xf32> to vector<8x1xf32>
    %57 = vector.broadcast %56 : vector<8x1xf32> to vector<8x8xf32>
    %58 = arith.divf %54, %57 : vector<8x8xf32>
    %59 = arith.index_cast %10 : i32 to index
    %c1 = arith.constant 1 : index
    %c0_25 = arith.constant 0 : index
    %c0_26 = arith.constant 0 : index
    %60 = vector.load %arg6[%59, %c1, %c0_25, %c0_26] : memref<1x5x8x8xf32, #tpu.memory_space<vmem>>, vector<1x1x8x8xf32>
    %61 = vector.shape_cast %60 : vector<1x1x8x8xf32> to vector<8x8xf32>
    %62 = vector.shape_cast %58 : vector<8x8xf32> to vector<1x1x8x8xf32>
    tpu.vector_store %arg6[%59, %c1, %c0_25, %c0_26], %62 {strides = array<i32>} : memref<1x5x8x8xf32, #tpu.memory_space<vmem>>, vector<1x1x8x8xf32>,
    %63 = arith.truncf %58 : vector<8x8xf32> to vector<8x8xbf16>
    %cst_27 = arith.constant dense<0.000000e+00> : vector<8x128xf32>
    %64 = tpu.matmul %63, %46, %cst_27 {dimension_numbers = #tpu.dot_dimension_numbers<[1], [0], [0], [1], [0, 0, 1, 1], [], []>} : vector<8x8xbf16>, vector<8x128xbf16>, vector<8x128xf32> -> vector<8x128xf32>
    %65 = arith.truncf %64 : vector<8x128xf32> to vector<8x128xbf16>
    %c1_28 = arith.constant 1 : index
    %c0_29 = arith.constant 0 : index
    %c0_30 = arith.constant 0 : index
    %66 = vector.load %arg3[%c1_28, %c0_29, %c0_30] : memref<5x128x256xbf16, #tpu.memory_space<vmem>>, vector<1x128x256xbf16>
    %67 = vector.shape_cast %66 : vector<1x128x256xbf16> to vector<128x256xbf16>
    %cst_31 = arith.constant dense<0.000000e+00> : vector<8x256xf32>
    %68 = tpu.matmul %65, %67, %cst_31 {dimension_numbers = #tpu.dot_dimension_numbers<[1], [0], [0], [1], [0, 0, 1, 1], [], []>} : vector<8x128xbf16>, vector<128x256xbf16>, vector<8x256xf32> -> vector<8x256xf32>
    %69 = arith.addf %40, %68 : vector<8x256xf32>
    %70 = arith.index_cast %12 : i32 to index
    %c256 = arith.constant 256 : index
    %71 = vector.load %arg7[%70, %c256] : memref<8x1920xbf16, #tpu.memory_space<vmem>>, vector<8x128xbf16>
    %72 = arith.index_cast %12 : i32 to index
    %c896 = arith.constant 896 : index
    %73 = vector.load %arg7[%72, %c896] : memref<8x1920xbf16, #tpu.memory_space<vmem>>, vector<8x128xbf16>
    %74 = arith.index_cast %12 : i32 to index
    %c1536 = arith.constant 1536 : index
    %75 = vector.load %arg7[%74, %c1536] : memref<8x1920xbf16, #tpu.memory_space<vmem>>, vector<8x128xbf16>
    %cst_32 = arith.constant 1.000000e+00 : bf16
    %76 = vector.broadcast %cst_32 : bf16 to vector<8x128xbf16>
    %77 = arith.select %8, %76, %71 : vector<8x128xi1>, vector<8x128xbf16>
    %cst_33 = arith.constant dense<0.000000e+00> : vector<8x8xf32>
    %78 = tpu.matmul %77, %73, %cst_33 {dimension_numbers = #tpu.dot_dimension_numbers<[1], [1], [0], [0], [0, 0, 1, 0], [], []>} : vector<8x128xbf16>, vector<8x128xbf16>, vector<8x8xf32> -> vector<8x8xf32>
    %cst_34 = arith.constant dense<0xFF800000> : vector<8xf32>
    %79 = vector.multi_reduction <maximumf>, %78, %cst_34 [1] : vector<8x8xf32> to vector<8xf32>
    %80 = vector.shape_cast %79 : vector<8xf32> to vector<8x1xf32>
    %81 = vector.broadcast %80 : vector<8x1xf32> to vector<8x8xf32>
    %82 = arith.subf %78, %81 : vector<8x8xf32>
    %83 = math.exp %82 : vector<8x8xf32>
    %cst_35 = arith.constant dense<0.000000e+00> : vector<8xf32>
    %84 = vector.multi_reduction <add>, %83, %cst_35 [1] : vector<8x8xf32> to vector<8xf32>
    %85 = vector.shape_cast %84 : vector<8xf32> to vector<8x1xf32>
    %86 = vector.broadcast %85 : vector<8x1xf32> to vector<8x8xf32>
    %87 = arith.divf %83, %86 : vector<8x8xf32>
    %88 = arith.index_cast %10 : i32 to index
    %c2 = arith.constant 2 : index
    %c0_36 = arith.constant 0 : index
    %c0_37 = arith.constant 0 : index
    %89 = vector.load %arg6[%88, %c2, %c0_36, %c0_37] : memref<1x5x8x8xf32, #tpu.memory_space<vmem>>, vector<1x1x8x8xf32>
    %90 = vector.shape_cast %89 : vector<1x1x8x8xf32> to vector<8x8xf32>
    %91 = vector.shape_cast %87 : vector<8x8xf32> to vector<1x1x8x8xf32>
    tpu.vector_store %arg6[%88, %c2, %c0_36, %c0_37], %91 {strides = array<i32>} : memref<1x5x8x8xf32, #tpu.memory_space<vmem>>, vector<1x1x8x8xf32>,
    %92 = arith.truncf %87 : vector<8x8xf32> to vector<8x8xbf16>
    %cst_38 = arith.constant dense<0.000000e+00> : vector<8x128xf32>
    %93 = tpu.matmul %92, %75, %cst_38 {dimension_numbers = #tpu.dot_dimension_numbers<[1], [0], [0], [1], [0, 0, 1, 1], [], []>} : vector<8x8xbf16>, vector<8x128xbf16>, vector<8x128xf32> -> vector<8x128xf32>
    %94 = arith.truncf %93 : vector<8x128xf32> to vector<8x128xbf16>
    %c2_39 = arith.constant 2 : index
    %c0_40 = arith.constant 0 : index
    %c0_41 = arith.constant 0 : index
    %95 = vector.load %arg3[%c2_39, %c0_40, %c0_41] : memref<5x128x256xbf16, #tpu.memory_space<vmem>>, vector<1x128x256xbf16>
    %96 = vector.shape_cast %95 : vector<1x128x256xbf16> to vector<128x256xbf16>
    %cst_42 = arith.constant dense<0.000000e+00> : vector<8x256xf32>
    %97 = tpu.matmul %94, %96, %cst_42 {dimension_numbers = #tpu.dot_dimension_numbers<[1], [0], [0], [1], [0, 0, 1, 1], [], []>} : vector<8x128xbf16>, vector<128x256xbf16>, vector<8x256xf32> -> vector<8x256xf32>
    %98 = arith.addf %69, %97 : vector<8x256xf32>
    %99 = arith.index_cast %12 : i32 to index
    %c384 = arith.constant 384 : index
    %100 = vector.load %arg7[%99, %c384] : memref<8x1920xbf16, #tpu.memory_space<vmem>>, vector<8x128xbf16>
    %101 = arith.index_cast %12 : i32 to index
    %c1024 = arith.constant 1024 : index
    %102 = vector.load %arg7[%101, %c1024] : memref<8x1920xbf16, #tpu.memory_space<vmem>>, vector<8x128xbf16>
    %103 = arith.index_cast %12 : i32 to index
    %c1664 = arith.constant 1664 : index
    %104 = vector.load %arg7[%103, %c1664] : memref<8x1920xbf16, #tpu.memory_space<vmem>>, vector<8x128xbf16>
    %cst_43 = arith.constant 1.000000e+00 : bf16
    %105 = vector.broadcast %cst_43 : bf16 to vector<8x128xbf16>
    %106 = arith.select %8, %105, %100 : vector<8x128xi1>, vector<8x128xbf16>
    %cst_44 = arith.constant dense<0.000000e+00> : vector<8x8xf32>
    %107 = tpu.matmul %106, %102, %cst_44 {dimension_numbers = #tpu.dot_dimension_numbers<[1], [1], [0], [0], [0, 0, 1, 0], [], []>} : vector<8x128xbf16>, vector<8x128xbf16>, vector<8x8xf32> -> vector<8x8xf32>
    %cst_45 = arith.constant dense<0xFF800000> : vector<8xf32>
    %108 = vector.multi_reduction <maximumf>, %107, %cst_45 [1] : vector<8x8xf32> to vector<8xf32>
    %109 = vector.shape_cast %108 : vector<8xf32> to vector<8x1xf32>
    %110 = vector.broadcast %109 : vector<8x1xf32> to vector<8x8xf32>
    %111 = arith.subf %107, %110 : vector<8x8xf32>
    %112 = math.exp %111 : vector<8x8xf32>
    %cst_46 = arith.constant dense<0.000000e+00> : vector<8xf32>
    %113 = vector.multi_reduction <add>, %112, %cst_46 [1] : vector<8x8xf32> to vector<8xf32>
    %114 = vector.shape_cast %113 : vector<8xf32> to vector<8x1xf32>
    %115 = vector.broadcast %114 : vector<8x1xf32> to vector<8x8xf32>
    %116 = arith.divf %112, %115 : vector<8x8xf32>
    %117 = arith.index_cast %10 : i32 to index
    %c3 = arith.constant 3 : index
    %c0_47 = arith.constant 0 : index
    %c0_48 = arith.constant 0 : index
    %118 = vector.load %arg6[%117, %c3, %c0_47, %c0_48] : memref<1x5x8x8xf32, #tpu.memory_space<vmem>>, vector<1x1x8x8xf32>
    %119 = vector.shape_cast %118 : vector<1x1x8x8xf32> to vector<8x8xf32>
    %120 = vector.shape_cast %116 : vector<8x8xf32> to vector<1x1x8x8xf32>
    tpu.vector_store %arg6[%117, %c3, %c0_47, %c0_48], %120 {strides = array<i32>} : memref<1x5x8x8xf32, #tpu.memory_space<vmem>>, vector<1x1x8x8xf32>,
    %121 = arith.truncf %116 : vector<8x8xf32> to vector<8x8xbf16>
    %cst_49 = arith.constant dense<0.000000e+00> : vector<8x128xf32>
    %122 = tpu.matmul %121, %104, %cst_49 {dimension_numbers = #tpu.dot_dimension_numbers<[1], [0], [0], [1], [0, 0, 1, 1], [], []>} : vector<8x8xbf16>, vector<8x128xbf16>, vector<8x128xf32> -> vector<8x128xf32>
    %123 = arith.truncf %122 : vector<8x128xf32> to vector<8x128xbf16>
    %c3_50 = arith.constant 3 : index
    %c0_51 = arith.constant 0 : index
    %c0_52 = arith.constant 0 : index
    %124 = vector.load %arg3[%c3_50, %c0_51, %c0_52] : memref<5x128x256xbf16, #tpu.memory_space<vmem>>, vector<1x128x256xbf16>
    %125 = vector.shape_cast %124 : vector<1x128x256xbf16> to vector<128x256xbf16>
    %cst_53 = arith.constant dense<0.000000e+00> : vector<8x256xf32>
    %126 = tpu.matmul %123, %125, %cst_53 {dimension_numbers = #tpu.dot_dimension_numbers<[1], [0], [0], [1], [0, 0, 1, 1], [], []>} : vector<8x128xbf16>, vector<128x256xbf16>, vector<8x256xf32> -> vector<8x256xf32>
    %127 = arith.addf %98, %126 : vector<8x256xf32>
    %128 = arith.index_cast %12 : i32 to index
    %c512 = arith.constant 512 : index
    %129 = vector.load %arg7[%128, %c512] : memref<8x1920xbf16, #tpu.memory_space<vmem>>, vector<8x128xbf16>
    %130 = arith.index_cast %12 : i32 to index
    %c1152 = arith.constant 1152 : index
    %131 = vector.load %arg7[%130, %c1152] : memref<8x1920xbf16, #tpu.memory_space<vmem>>, vector<8x128xbf16>
    %132 = arith.index_cast %12 : i32 to index
    %c1792 = arith.constant 1792 : index
    %133 = vector.load %arg7[%132, %c1792] : memref<8x1920xbf16, #tpu.memory_space<vmem>>, vector<8x128xbf16>
    %cst_54 = arith.constant 1.000000e+00 : bf16
    %134 = vector.broadcast %cst_54 : bf16 to vector<8x128xbf16>
    %135 = arith.select %8, %134, %129 : vector<8x128xi1>, vector<8x128xbf16>
    %cst_55 = arith.constant dense<0.000000e+00> : vector<8x8xf32>
    %136 = tpu.matmul %135, %131, %cst_55 {dimension_numbers = #tpu.dot_dimension_numbers<[1], [1], [0], [0], [0, 0, 1, 0], [], []>} : vector<8x128xbf16>, vector<8x128xbf16>, vector<8x8xf32> -> vector<8x8xf32>
    %cst_56 = arith.constant dense<0xFF800000> : vector<8xf32>
    %137 = vector.multi_reduction <maximumf>, %136, %cst_56 [1] : vector<8x8xf32> to vector<8xf32>
    %138 = vector.shape_cast %137 : vector<8xf32> to vector<8x1xf32>
    %139 = vector.broadcast %138 : vector<8x1xf32> to vector<8x8xf32>
    %140 = arith.subf %136, %139 : vector<8x8xf32>
    %141 = math.exp %140 : vector<8x8xf32>
    %cst_57 = arith.constant dense<0.000000e+00> : vector<8xf32>
    %142 = vector.multi_reduction <add>, %141, %cst_57 [1] : vector<8x8xf32> to vector<8xf32>
    %143 = vector.shape_cast %142 : vector<8xf32> to vector<8x1xf32>
    %144 = vector.broadcast %143 : vector<8x1xf32> to vector<8x8xf32>
    %145 = arith.divf %141, %144 : vector<8x8xf32>
    %146 = arith.index_cast %10 : i32 to index
    %c4 = arith.constant 4 : index
    %c0_58 = arith.constant 0 : index
    %c0_59 = arith.constant 0 : index
    %147 = vector.load %arg6[%146, %c4, %c0_58, %c0_59] : memref<1x5x8x8xf32, #tpu.memory_space<vmem>>, vector<1x1x8x8xf32>
    %148 = vector.shape_cast %147 : vector<1x1x8x8xf32> to vector<8x8xf32>
    %149 = vector.shape_cast %145 : vector<8x8xf32> to vector<1x1x8x8xf32>
    tpu.vector_store %arg6[%146, %c4, %c0_58, %c0_59], %149 {strides = array<i32>} : memref<1x5x8x8xf32, #tpu.memory_space<vmem>>, vector<1x1x8x8xf32>,
    %150 = arith.truncf %145 : vector<8x8xf32> to vector<8x8xbf16>
    %cst_60 = arith.constant dense<0.000000e+00> : vector<8x128xf32>
    %151 = tpu.matmul %150, %133, %cst_60 {dimension_numbers = #tpu.dot_dimension_numbers<[1], [0], [0], [1], [0, 0, 1, 1], [], []>} : vector<8x8xbf16>, vector<8x128xbf16>, vector<8x128xf32> -> vector<8x128xf32>
    %152 = arith.truncf %151 : vector<8x128xf32> to vector<8x128xbf16>
    %c4_61 = arith.constant 4 : index
    %c0_62 = arith.constant 0 : index
    %c0_63 = arith.constant 0 : index
    %153 = vector.load %arg3[%c4_61, %c0_62, %c0_63] : memref<5x128x256xbf16, #tpu.memory_space<vmem>>, vector<1x128x256xbf16>
    %154 = vector.shape_cast %153 : vector<1x128x256xbf16> to vector<128x256xbf16>
    %cst_64 = arith.constant dense<0.000000e+00> : vector<8x256xf32>
    %155 = tpu.matmul %152, %154, %cst_64 {dimension_numbers = #tpu.dot_dimension_numbers<[1], [0], [0], [1], [0, 0, 1, 1], [], []>} : vector<8x128xbf16>, vector<128x256xbf16>, vector<8x256xf32> -> vector<8x256xf32>
    %156 = arith.addf %127, %155 : vector<8x256xf32>
    %157 = vector.broadcast %5 : vector<1x256xf32> to vector<8x256xf32>
    %158 = arith.addf %156, %157 : vector<8x256xf32>
    %159 = arith.index_cast %12 : i32 to index
    %c0_65 = arith.constant 0 : index
    %160 = vector.load %arg5[%159, %c0_65] : memref<8x256xf32, #tpu.memory_space<vmem>>, vector<8x256xf32>
    tpu.vector_store %arg5[%159, %c0_65], %158 {strides = array<i32>} : memref<8x256xf32, #tpu.memory_space<vmem>>, vector<8x256xf32>,
    %c1_i32_66 = arith.constant 1 : i32
    return
  }
  func.func @transform_0(%arg0: i32) -> (i32, i32) {
    %c0_i32 = arith.constant 0 : i32
    %c0_i32_0 = arith.constant 0 : i32
    return %arg0, %c0_i32 : i32, i32
  }
  func.func @transform_1(%arg0: i32) -> (i32, i32) {
    %c0_i32 = arith.constant 0 : i32
    %c0_i32_0 = arith.constant 0 : i32
    %c0_i32_1 = arith.constant 0 : i32
    return %c0_i32, %c0_i32_0 : i32, i32
  }
  func.func @transform_2(%arg0: i32) -> (i32, i32, i32) {
    %c0_i32 = arith.constant 0 : i32
    %c0_i32_0 = arith.constant 0 : i32
    %c0_i32_1 = arith.constant 0 : i32
    %c0_i32_2 = arith.constant 0 : i32
    return %c0_i32, %c0_i32_0, %c0_i32_1 : i32, i32, i32
  }
  func.func @transform_3(%arg0: i32) -> (i32, i32) {
    %c0_i32 = arith.constant 0 : i32
    %c0_i32_0 = arith.constant 0 : i32
    %c0_i32_1 = arith.constant 0 : i32
    return %c0_i32, %c0_i32_0 : i32, i32
  }
  func.func @transform_4(%arg0: i32) -> (i32, i32) {
    %c0_i32 = arith.constant 0 : i32
    %c0_i32_0 = arith.constant 0 : i32
    return %arg0, %c0_i32 : i32, i32
  }
  func.func @transform_5(%arg0: i32) -> (i32, i32, i32, i32) {
    %c0_i32 = arith.constant 0 : i32
    %c0_i32_0 = arith.constant 0 : i32
    %c0_i32_1 = arith.constant 0 : i32
    %c0_i32_2 = arith.constant 0 : i32
    return %arg0, %c0_i32, %c0_i32_0, %c0_i32_1 : i32, i32, i32, i32
  }
}

</mosaic_0001>

<bundles_post_ra>
// kernel: multi_head_attention.1
= control target key start
LH: loop header
LB: loop body
LE: loop exit
PB: predicated region body
PF: predicated region fallthrough
CT: control target
= control target key end

     0   :  { %11 = vsyncpa [#allocation4], 0  ;;  %s4452_s0 = inlined_call_operand.vmem [shape: bf16[16,170], index: 0, kind: input, shape index: {}]   ;;  %s4453_s1 = inlined_call_operand.hbm [shape: bf16[170,1920], index: 1, kind: input, shape index: {}]   ;;  %s4454_s2 = inlined_call_operand.hbm [shape: bf16[5,128,256], index: 2, kind: input, shape index: {}]   ;;  %s4455_s3 = inlined_call_operand.vmem [shape: f32[1,256], index: 3, kind: input, shape index: {}]   ;;  %s4456_s4 = inlined_call_operand.vmem [shape: f32[16,256], index: 4, kind: output, shape index: {0}]   ;;  %s4457_s5 = inlined_call_operand.hbm [shape: f32[2,5,8,8], index: 5, kind: output, shape index: {1}]  }
   0x1   :  { %12 = vsyncpa [#allocation7], 0 }
   0x2   :  { %13 = vsyncpa [#allocation5], 0 }
   0x3   :  { %15 = vsyncpa [#allocation5 + $0x1], 0  ;;  %s4105_s18 = smov 0   ;;  %s4107_s19 = smov 0  }
   0x4   :  { %s4109_s20 = smov 0   ;;  %s4111_s21 = smov 0  }
   0x5 LB: > { %s4126_s22 = sadd.s32 4294967295, %s4061_s21   ;;  %s3096_s23 = sadd.s32 4294967294, %s4061_s21   ;;  %s4061_s21 = sphi %s4111_s21, %s4477_s21   ;;  %s4057_s20 = sphi %s4109_s20, %s4476_s20   ;;  %s4053_s19 = sphi %s4107_s19, %s4475_s19   ;;  %s4049_s18 = sphi %s4105_s18, %s4474_s18  }
   0x6   : > { %s4130_s24 = sadd.s32 1, %s4061_s21   ;;  %s143_s25 = sadd.s32 1, %s4057_s20 }
   0x7   : > { %s140_s26 = ssub.s32 %s4061_s21, %s4130_s24  ;;  %p153_p0 = scmp.ne.s32.totalorder %s4057_s20, %s4053_s19 }
   0x8   : > { %p141_p1 = scmp.eq.s32.totalorder %s140_s26, 0  ;;  %p154_p2 = scmp.eq.s32.totalorder %s4126_s22, 1 }
   0x9   : > { %p159_p3 = scmp.ne.s32.totalorder %s4053_s19, %s4049_s18  ;;  %p160_p4 = scmp.eq.s32.totalorder %s3096_s23, 1 }
   0xa   : > { %s4141_s27 = scalar_select %p141_p1, %s4057_s20, %s143_s25  }
   0xb   : > { %p4143_p5 = por %p154_p2, %p153_p0  ;;  %p4147_p6 = por %p160_p4, %p159_p3 }
   0xc   : > { %p3097_p7 = scmp.ge.s32.totalorder %s4061_s21, 1  ;;  %p167_p8 = scmp.lt.s32.totalorder %s4061_s21, 3 }
   0xd   : > { %s4461_s28 = scalar_select %p4143_p5, 1, 0 }
   0xe   : > { %s4462_s29 = scalar_select %p4147_p6, 1, 0 }
   0xf   : > { %p4458_p9 = scmp.eq.s32.totalorder %s4126_s22, 0  ;;  %p4154_p10 = pnand %p3097_p7, %p167_p8 }
  0x10   : > { %s4063_s6 = smov [#allocation3]   ;;  %s4064_s9 = smov [#allocation6]  }
  0x11   : > { %s4463_s30 = scalar_select %p4154_p10, 1, 0 }
  0x12   : > { %s179_s7 = sshll.u32 %s4063_s6, 4  ;;  %p3492_p11 = pneg %p4154_p10  ;;  %s180_s7 = int_to_ptr.vmem [resolvable:$true] %s179_s7 }
  0x13   : > { %s192_s10 = sshll.u32 %s4064_s9, 4  ;;  %s3935_s13 = scalar_lea.hbm %s4453_s1, 21120  ;;  %s4166_s10 = int_to_ptr.vmem [resolvable:$true] %s192_s10 }
  0x14   : > { %p4162_p12 = pnand %p4458_p9, %p3492_p11  ;;  %p3936_p13 = scmp.ne.s32.totalorder %s4453_s1, %s3935_s13 }
  0x15   : > { %p3942_p3 = scmp.lt.u32.totalorder %s3935_s13, %s4453_s1 }
  0x16   : > { %p3937_p0 = pneg %p4162_p12 }
  0x18   : > { %p3938_p1 = pnand %p3937_p0, %p3936_p13 }
  0x1a   : > { %p3939_p2 = pneg %p3938_p1 }
  0x1c   : > { %p3944_p4 = pnand %p3942_p3, %p3939_p2 }
  0x1e   : > { %3947 = shalt.err (!%p3944_p4)
}
  0x1f   : > { %s3948_s23 = scalar_lea.vmem %s180_s7, 21120  ;;  %p3956_p9 = scmp.lt.s32.totalorder %s180_s7, %s180_s7 }
  0x20   : > { %p3949_p7 = scmp.ne.s32.totalorder %s180_s7, %s3948_s23  ;;  %p3957_p6 = scmp.lt.s32.totalorder %s3948_s23, %s3948_s23 }
  0x22   : > { %p3951_p8 = pnand %p3949_p7, %p3937_p0  ;;  %p3958_p5 = por %p3957_p6, %p3956_p9 }
  0x24   : > { %p3952_p11 = pneg %p3951_p8 }
  0x26   : > { %p3959_p10 = pnand %p3958_p5, %p3952_p11 }
  0x28   : > { %3962 = shalt.err (!%p3959_p10)
}
  0x29   : > { %s4065_s25 = smov 960   ;;  %s4066_s26 = smov 60  }
  0x2a   : > { %3495 = dma.hbm_to_vmem [thread:$0]  (!%p4162_p12), %s4453_s1, 21120, %s180_s7, [#allocation4], %s4065_s25, %s4065_s25, %s4066_s26  }
  0x2b   : > { %s3963_s13 = scalar_lea.hbm %s4454_s2, 10240 }
  0x2c   : > { %p3964_p13 = scmp.ne.s32.totalorder %s4454_s2, %s3963_s13  ;;  %p3970_p9 = scmp.lt.u32.totalorder %s3963_s13, %s4454_s2 }
  0x2e   : > { %p3966_p5 = pnand %p3964_p13, %p3937_p0 }
  0x30   : > { %p3967_p6 = pneg %p3966_p5 }
  0x32   : > { %p3972_p10 = pnand %p3970_p9, %p3967_p6 }
  0x34   : > { %3975 = shalt.err (!%p3972_p10)
}
  0x35   : > { %s3976_s7 = scalar_lea.vmem %s4166_s10, 10240  ;;  %p3984_p4 = scmp.lt.s32.totalorder %s4166_s10, %s4166_s10 }
  0x36   : > { %p3977_p1 = scmp.ne.s32.totalorder %s4166_s10, %s3976_s7  ;;  %p3985_p7 = scmp.lt.s32.totalorder %s3976_s7, %s3976_s7 }
  0x38   : > { %p3979_p2 = pnand %p3977_p1, %p3937_p0  ;;  %p3986_p8 = por %p3985_p7, %p3984_p4 }
  0x3a   : > { %p3980_p3 = pneg %p3979_p2 }
  0x3c   : > { %p3987_p11 = pnand %p3986_p8, %p3980_p3 }
  0x3e   : > { %3990 = shalt.err (!%p3987_p11)
}
  0x3f   : > { %s4067_s23 = smov 128   ;;  %s4068_s25 = smov 8  }
  0x40   : > { %3498 = dma.hbm_to_vmem [thread:$0]  (!%p4162_p12), %s4454_s2, 10240, %s4166_s10, [#allocation7], %s4067_s23, %s4067_s23, %s4068_s25  }
  0x41   : > { %p4465_p13 = scmp.ne.s32.totalorder %s4463_s30, 0 }
  0x42   : > { %p4466_p0 = scmp.eq.s32.totalorder (!%p4465_p13), %s4126_s22, 0 }
  0x43   : > { %219 = sbr.rel (%p4465_p13) target bundleno = 3393 (0xd41), region = 36 }
  0x4a   : > { %4036 = dma.done.wait (%p4466_p0), [#allocation4], 21120   ;;  %p4467_p5 = pmov %p4466_p0 }
  0x4b   : > { %p4468_p6 = pmov %p4466_p0 }
  0x4c   : > { %4038 = vsyncadd (%p4467_p5), [#allocation4], 4294946176 }
  0x4d   : > { %4040 = dma.done.wait (%p4468_p6), [#allocation7], 10240   ;;  %p4469_p9 = pmov %p4466_p0 }
  0x4e   : > { %v3551_v0 = vld [vmem:[#allocation3 + $0x4] ss:$60 sps:$4 sm:$0xff]   ;;  %p256_p12 = scmp.lt.s32.totalorder %s4126_s22, 1  ;;  %v3554_v2 = vld [vmem:[#allocation3 + $0x7c] ss:$60 sps:$4 sm:$0xff]   ;;  %vm1272_vm0 = vcmask 343040  }
  0x4f   : > { %4042 = vsyncadd (%p4469_p9), [#allocation7], 4294957056  ;;  %v3553_v1 = vld [vmem:[#allocation3] ss:$60 sps:$4 sm:$0xff]   ;;  %1322 = vmatprep.subr.bf16.mxu0 %v3551_v0  ;;  %v3556_v3 = vld [vmem:[#allocation3 + $0x78] ss:$60 sps:$4 sm:$0xff]  }
  0x50   : > { %1323 = vmatpush1.bf16.msra.mxu0 %v3553_v1  ;;  %v3557_v4 = vld [vmem:[#allocation3 + $0xf4] ss:$60 sps:$4 sm:$0xff]   ;;  %s4227_s30 = scalar_select %p256_p12, %s4126_s22, 1  ;;  %v3560_v6 = vld [vmem:[#allocation3 + $0x16c] ss:$60 sps:$4 sm:$0xff]   ;;  %vm1276_vm1 = vcmask 1044480  }
  0x51   : > { %1324 = vmatprep.subr.bf16.mxu0 %v3554_v2  ;;  %v3559_v5 = vld [vmem:[#allocation3 + $0xf0] ss:$60 sps:$4 sm:$0xff]   ;;  %v3562_v7 = vld [vmem:[#allocation3 + $0x168] ss:$60 sps:$4 sm:$0xff]   ;;  %v3565_v9 = vld [vmem:[#allocation3 + $0x1e0] ss:$60 sps:$4 sm:$0xff]  }
  0x52   : > { %s3390_s8 = sshll.u32 %s4227_s30, 3  ;;  %v3563_v8 = vld [vmem:[#allocation3 + $0x1e4] ss:$60 sps:$4 sm:$0xff]   ;;  %v3566_v11 = vld [vmem:[#allocation3 + $0x25c] ss:$60 sps:$4 sm:$0xff]   ;;  %vm4071_vm2 = vmmov 0  }
  0x53   : > { %s260_s11 = scalar_lea.vmem %s4452_s0, %s3390_s8  ;;  %v3568_v13 = vld [vmem:[#allocation3 + $0x258] ss:$60 sps:$4 sm:$0xff]   ;;  %v3571_v15 = vld [vmem:[#allocation3 + $0x2d0] ss:$60 sps:$4 sm:$0xff]   ;;  %v3574_v17 = vld [vmem:[#allocation3 + $0x348] ss:$60 sps:$4 sm:$0xff]  }
  0x54   : > { %1325 = vmatpush1.bf16.msra.mxu0 %v3556_v3  ;;  %v268_v10 = vld [vmem:[%s260_s11] sm:$0xff]  ;;  %v3569_v14 = vld [vmem:[#allocation3 + $0x2d4] ss:$60 sps:$4 sm:$0xff]   ;;  %v3577_v19 = vld [vmem:[#allocation3 + $0x3c0] ss:$60 sps:$4 sm:$0xff]   ;;  %vm1787_vm5 = vcmask 1043456  }
  0x55   : > { %1326 = vmatprep.subr.bf16.mxu0 %v3557_v4  ;;  %v4233_v12 = vcombine.high %v268_v10, %v268_v10  ;;  %v3572_v16 = vld [vmem:[#allocation3 + $0x34c] ss:$60 sps:$4 sm:$0xff]   ;;  %v3575_v18 = vld [vmem:[#allocation3 + $0x3c4] ss:$60 sps:$4 sm:$0xff]   ;;  %v3578_v22 = vld [vmem:[#allocation3 + $0x43c] ss:$60 sps:$4 sm:$0xff]   ;;  %v4241_v34 = vcombine.low %v268_v10, %v268_v10 }
  0x56   : > { %v3619_v20 = vld [vmem:[#allocation3 + $0xc] ss:$60 sps:$4 sm:$0xff]   ;;  %v3622_v23 = vld [vmem:[#allocation3 + $0x84] ss:$60 sps:$4 sm:$0xff]   ;;  %v3580_v24 = vld [vmem:[#allocation3 + $0x438] ss:$60 sps:$4 sm:$0xff]  }
  0x57   : > { %3276 = vmatprep.mubr.msk.bf16.mxu0 %vm1272_vm0, %v4233_v12  ;;  %3278 = vmatprep.mubr.msk.bf16.mxu1 %vm1272_vm0, %v4233_v12  ;;  %v3621_v21 = vld [vmem:[#allocation3 + $0x8] ss:$60 sps:$4 sm:$0xff]   ;;  %v3624_v25 = vld [vmem:[#allocation3 + $0x80] ss:$60 sps:$4 sm:$0xff]   ;;  %v3627_v29 = vld [vmem:[#allocation3 + $0xf8] ss:$60 sps:$4 sm:$0xff]  }
  0x58   : > { %1327 = vmatpush1.bf16.msra.mxu0 %v3559_v5  ;;  %1363 = vmatprep.subr.bf16.mxu1 %v3619_v20  ;;  %v3625_v26 = vld [vmem:[#allocation3 + $0xfc] ss:$60 sps:$4 sm:$0xff]   ;;  %v3581_v27 = vld [vmem:[#allocation3 + $0x4b4] ss:$60 sps:$4 sm:$0x1f]   ;;  %vm1770_vm6 = vcmask 64512  }
  0x59   : > { %1328 = vmatprep.subr.bf16.mxu0 %v3560_v6  ;;  %1364 = vmatpush1.bf16.msra.mxu1 %v3621_v21  ;;  %v3583_v28 = vld [vmem:[#allocation3 + $0x4b0] ss:$60 sps:$4 sm:$0x1f]   ;;  %v3633_v38 = vld [vmem:[#allocation3 + $0x1e8] ss:$60 sps:$4 sm:$0xff]   ;;  %s253_s12 = sand.u32 1, %s4053_s19  }
  0x5a   : > { %1365 = vmatprep.subr.bf16.mxu1 %v3622_v23  ;;  %v3628_v30 = vld [vmem:[#allocation3 + $0x174] ss:$60 sps:$4 sm:$0xff]   ;;  %v1278_v31 = vsel %vm1276_vm1, %v3583_v28, 0  ;;  %v3631_v35 = vld [vmem:[#allocation3 + $0x1ec] ss:$60 sps:$4 sm:$0xff]   ;;  %s3480_s13 = smul.u32 40, %s253_s12 }
  0x5b   : > { %v3588_v32 = vld [vmem:[#allocation3 + $0x14] ss:$60 sps:$4 sm:$0xff]   ;;  %v3591_v37 = vld [vmem:[#allocation3 + $0x8c] ss:$60 sps:$4 sm:$0xff]   ;;  %v3634_v39 = vld [vmem:[#allocation3 + $0x264] ss:$60 sps:$4 sm:$0xff]  }
  0x5c   : > { %1329 = vmatpush1.bf16.msra.mxu0 %v3562_v7  ;;  %v3630_v33 = vld [vmem:[#allocation3 + $0x170] ss:$60 sps:$4 sm:$0xff]   ;;  %v3589_v40 = vld [vmem:[#allocation3 + $0x88] ss:$60 sps:$4 sm:$0xff]   ;;  %v3636_v42 = vld [vmem:[#allocation3 + $0x260] ss:$60 sps:$4 sm:$0xff]  }
  0x5d   : > { %1330 = vmatprep.subr.bf16.mxu0 %v3563_v8  ;;  %1366 = vmatpush1.bf16.msra.mxu1 %v3624_v25  ;;  %v3586_v36 = vld [vmem:[#allocation3 + $0x10] ss:$60 sps:$4 sm:$0xff]   ;;  %v3594_v41 = vld [vmem:[#allocation3 + $0x104] ss:$60 sps:$4 sm:$0xff]   ;;  %v3637_v43 = vld [vmem:[#allocation3 + $0x2dc] ss:$60 sps:$4 sm:$0xff]  }
  0x5e   : > { %1367 = vmatprep.subr.bf16.mxu1 %v3625_v26  ;;  %v3592_v44 = vld [vmem:[#allocation3 + $0x100] ss:$60 sps:$4 sm:$0xff]   ;;  %v3639_v46 = vld [vmem:[#allocation3 + $0x2d8] ss:$60 sps:$4 sm:$0xff]   ;;  %v3642_v50 = vld [vmem:[#allocation3 + $0x350] ss:$60 sps:$4 sm:$0xff]  }
  0x5f   : > { %v3597_v45 = vld [vmem:[#allocation3 + $0x17c] ss:$60 sps:$4 sm:$0xff]   ;;  %v3640_v47 = vld [vmem:[#allocation3 + $0x354] ss:$60 sps:$4 sm:$0xff]   ;;  %v3643_v51 = vld [vmem:[#allocation3 + $0x3cc] ss:$60 sps:$4 sm:$0xff]  }
  0x60   : > { %1331 = vmatpush1.bf16.msra.mxu0 %v3565_v9  ;;  %v3595_v48 = vld [vmem:[#allocation3 + $0x178] ss:$60 sps:$4 sm:$0xff]   ;;  %v3598_v52 = vld [vmem:[#allocation3 + $0x1f0] ss:$60 sps:$4 sm:$0xff]   ;;  %v3645_v54 = vld [vmem:[#allocation3 + $0x3c8] ss:$60 sps:$4 sm:$0xff]  }
  0x61   : > { %1332 = vmatprep.subr.bf16.mxu0 %v3566_v11  ;;  %1368 = vmatpush1.bf16.msra.mxu1 %v3627_v29  ;;  %v3600_v49 = vld [vmem:[#allocation3 + $0x1f4] ss:$60 sps:$4 sm:$0xff]   ;;  %v3603_v53 = vld [vmem:[#allocation3 + $0x26c] ss:$60 sps:$4 sm:$0xff]   ;;  %v3646_v55 = vld [vmem:[#allocation3 + $0x444] ss:$60 sps:$4 sm:$0xff]  }
  0x62   : > { %1369 = vmatprep.subr.bf16.mxu1 %v3628_v30  ;;  %v3601_v56 = vld [vmem:[#allocation3 + $0x268] ss:$60 sps:$4 sm:$0xff]   ;;  %v3648_v58 = vld [vmem:[#allocation3 + $0x440] ss:$60 sps:$4 sm:$0xff]   ;;  %v3607_v1 = vld [vmem:[#allocation3 + $0x358] ss:$60 sps:$4 sm:$0xff]  }
  0x63   : > { %v3606_v57 = vld [vmem:[#allocation3 + $0x2e4] ss:$60 sps:$4 sm:$0xff]   ;;  %v3649_v59 = vld [vmem:[#allocation3 + $0x4bc] ss:$60 sps:$4 sm:$0x1f]   ;;  %s4299_s14 = scalar_lea.vmem [#allocation8], %s3480_s13 }
  0x64   : > { %1333 = vmatpush1.bf16.msra.mxu0 %v3568_v13  ;;  %v3651_v60 = vld [vmem:[#allocation3 + $0x4b8] ss:$60 sps:$4 sm:$0x1f]   ;;  %v3604_v61 = vld [vmem:[#allocation3 + $0x2e0] ss:$60 sps:$4 sm:$0xff]   ;;  %s3481_s15 = smul.u32 640, %s4126_s22 }
  0x65   : > { %1334 = vmatprep.subr.bf16.mxu0 %v3569_v14  ;;  %1370 = vmatpush1.bf16.msra.mxu1 %v3630_v33  ;;  %v3609_v62 = vld [vmem:[#allocation3 + $0x35c] ss:$60 sps:$4 sm:$0xff]   ;;  %v1284_v63 = vsel %vm1276_vm1, %v3651_v60, 0  ;;  %v3612_v2 = vld [vmem:[#allocation3 + $0x3d4] ss:$60 sps:$4 sm:$0xff]   ;;  %s2987_s16 = sshll.u32 %s4299_s14, 4  ;;  %s4399_s16 = int_to_ptr.vmem [resolvable:$true] %s2987_s16 }
  0x66   : > { %1371 = vmatprep.subr.bf16.mxu1 %v3631_v35  ;;  %v3654_v0 = vld [vmem:[#allocation3 + $0x1c] ss:$60 sps:$4 sm:$0xff]   ;;  %v3610_v4 = vld [vmem:[#allocation3 + $0x3d0] ss:$60 sps:$4 sm:$0xff]   ;;  %v3613_v9 = vld [vmem:[#allocation3 + $0x448] ss:$60 sps:$4 sm:$0xff]   ;;  %s4397_s23 = scalar_lea.hbm %s4457_s5, %s3481_s15 }
  0x67   : > { %v3652_v3 = vld [vmem:[#allocation3 + $0x18] ss:$60 sps:$4 sm:$0xff]   ;;  %v3615_v6 = vld [vmem:[#allocation3 + $0x44c] ss:$60 sps:$4 sm:$0xff]   ;;  %v3663_v14 = vld [vmem:[#allocation3 + $0x184] ss:$60 sps:$4 sm:$0xff]  }
  0x68   : > { %1335 = vmatpush1.bf16.msra.mxu0 %v3571_v15  ;;  %v3657_v5 = vld [vmem:[#allocation3 + $0x94] ss:$60 sps:$4 sm:$0xff]   ;;  %v3660_v8 = vld [vmem:[#allocation3 + $0x10c] ss:$60 sps:$4 sm:$0xff]   ;;  %v3661_v15 = vld [vmem:[#allocation3 + $0x180] ss:$60 sps:$4 sm:$0xff]  }
  0x69   : > { %1336 = vmatprep.subr.bf16.mxu0 %v3572_v16  ;;  %1372 = vmatpush1.bf16.msra.mxu1 %v3633_v38  ;;  %v3655_v7 = vld [vmem:[#allocation3 + $0x90] ss:$60 sps:$4 sm:$0xff]   ;;  %v3616_v10 = vld [vmem:[#allocation3 + $0x4c4] ss:$60 sps:$4 sm:$0x1f]   ;;  %s4403_s25 = scalar_lea.sflag [#allocation5], %s253_s12 }
  0x6a   : > { %1373 = vmatprep.subr.bf16.mxu1 %v3634_v39  ;;  %v3618_v11 = vld [vmem:[#allocation3 + $0x4c0] ss:$60 sps:$4 sm:$0x1f]   ;;  %v3658_v13 = vld [vmem:[#allocation3 + $0x108] ss:$60 sps:$4 sm:$0xff]   ;;  %s3991_s26 = scalar_lea.vmem %s4399_s16, 640 }
  0x6b   : > { %v1290_v16 = vsel %vm1276_vm1, %v3618_v11, 0  ;;  %v3667_v20 = vld [vmem:[#allocation3 + $0x270] ss:$60 sps:$4 sm:$0xff]   ;;  %v3675_v23 = vld [vmem:[#allocation3 + $0x364] ss:$60 sps:$4 sm:$0xff]   ;;  %p3992_p10 = scmp.ne.s32.totalorder %s4399_s16, %s3991_s26  ;;  %p4472_p1 = scmp.ne.s32.totalorder %s4461_s28, 0 }
  0x6c   : > { %1337 = vmatpush1.bf16.msra.mxu0 %v3574_v17  ;;  %v3666_v17 = vld [vmem:[#allocation3 + $0x1fc] ss:$60 sps:$4 sm:$0xff]   ;;  %v3672_v21 = vld [vmem:[#allocation3 + $0x2ec] ss:$60 sps:$4 sm:$0xff]   ;;  %v3690_v35 = vld [vmem:[#allocation3 + $0xa4] ss:$60 sps:$4 sm:$0xff]  }
  0x6d   : > { %1338 = vmatprep.subr.bf16.mxu0 %v3575_v18  ;;  %1374 = vmatpush1.bf16.msra.mxu1 %v3636_v42  ;;  %v3664_v18 = vld [vmem:[#allocation3 + $0x1f8] ss:$60 sps:$4 sm:$0xff]   ;;  %v3679_v28 = vld [vmem:[#allocation3 + $0x450] ss:$60 sps:$4 sm:$0xff]   ;;  %v3685_v33 = vld [vmem:[#allocation3 + $0x28] ss:$60 sps:$4 sm:$0xff]   ;;  %p3993_p2 = pnand %p3992_p10, %p4472_p1 }
  0x6e   : > { %1375 = vmatprep.subr.bf16.mxu1 %v3637_v43  ;;  %v3678_v25 = vld [vmem:[#allocation3 + $0x3dc] ss:$60 sps:$4 sm:$0xff]   ;;  %v3682_v29 = vld [vmem:[#allocation3 + $0x4cc] ss:$60 sps:$4 sm:$0x1f]   ;;  %s4072_s22 = smov [#allocation8]  }
  0x6f   : > { %v3676_v26 = vld [vmem:[#allocation3 + $0x3d8] ss:$60 sps:$4 sm:$0xff]   ;;  %v3684_v30 = vld [vmem:[#allocation3 + $0x4c8] ss:$60 sps:$4 sm:$0x1f]   ;;  %p3994_p3 = pneg %p3993_p2  ;;  %s3995_s6 = sshll.u32 %s4072_s22, 4  ;;  %s3996_s6 = int_to_ptr.vmem [resolvable:$false] %s3995_s6 }
  0x70   : > { %1339 = vmatpush1.bf16.msra.mxu0 %v3577_v19  ;;  %v3669_v19 = vld [vmem:[#allocation3 + $0x274] ss:$60 sps:$4 sm:$0xff]   ;;  %v3697_v42 = vld [vmem:[#allocation3 + $0x208] ss:$60 sps:$4 sm:$0xff]   ;;  %v3721_v60 = vld [vmem:[#allocation3 + $0x1a0] ss:$60 sps:$4 sm:$0xff]   ;;  %p3998_p4 = scmp.lt.s32.totalorder %s4399_s16, %s3996_s6 }
  0x71   : > { %1340 = vmatprep.subr.bf16.mxu0 %v3578_v22  ;;  %1376 = vmatpush1.bf16.msra.mxu1 %v3639_v46  ;;  %v3670_v22 = vld [vmem:[#allocation3 + $0x2e8] ss:$60 sps:$4 sm:$0xff]   ;;  %v3691_v38 = vld [vmem:[#allocation3 + $0x118] ss:$60 sps:$4 sm:$0xff]   ;;  %s3997_s8 = scalar_lea.vmem %s3996_s6, 1280 }
  0x72   : > { %1377 = vmatprep.subr.bf16.mxu1 %v3640_v47  ;;  %v3696_v39 = vld [vmem:[#allocation3 + $0x194] ss:$60 sps:$4 sm:$0xff]   ;;  %v3702_v43 = vld [vmem:[#allocation3 + $0x284] ss:$60 sps:$4 sm:$0xff]   ;;  %p3999_p7 = scmp.lt.s32.totalorder %s3997_s8, %s3991_s26 }
  0x73   : > { %v3703_v46 = vld [vmem:[#allocation3 + $0x2f8] ss:$60 sps:$4 sm:$0xff]  }
  0x74   : > { %1341 = vmatpush1.bf16.msra.mxu0 %v3580_v24  ;;  %v3673_v24 = vld [vmem:[#allocation3 + $0x360] ss:$60 sps:$4 sm:$0xff]   ;;  %v3708_v47 = vld [vmem:[#allocation3 + $0x374] ss:$60 sps:$4 sm:$0xff]   ;;  %p4000_p8 = por %p3999_p7, %p3998_p4 }
  0x75   : > { %3275 = vmatprep.subr.msk.bf16.mxu0 %vm1276_vm1, %v3581_v27  ;;  %1378 = vmatpush1.bf16.msra.mxu1 %v3642_v50  ;;  %v3681_v27 = vld [vmem:[#allocation3 + $0x454] ss:$60 sps:$4 sm:$0xff]   ;;  %v3709_v50 = vld [vmem:[#allocation3 + $0x3e8] ss:$60 sps:$4 sm:$0xff]  }
  0x76   : > { %1379 = vmatprep.subr.bf16.mxu1 %v3643_v51  ;;  %v3714_v51 = vld [vmem:[#allocation3 + $0x464] ss:$60 sps:$4 sm:$0xff]   ;;  %p4001_p11 = pnand %p4000_p8, %p3994_p3 }
  0x78   : > { %1343 = vmatpush1.bf16.msra.mxu0 %v1278_v31  ;;  %v3687_v31 = vld [vmem:[#allocation3 + $0x2c] ss:$60 sps:$4 sm:$0xff]  }
  0x79   : > { %1404 = vmatprep.subr.bf16.mxu0 %v3588_v32  ;;  %1380 = vmatpush1.bf16.msra.mxu1 %v3645_v54  ;;  %v1296_v32 = vsel %vm1276_vm1, %v3684_v30, 0  ;;  %v3717_v54 = vld [vmem:[#allocation3 + $0x4d8] ss:$60 sps:$4 sm:$0x1f]  }
  0x7a   : > { %1381 = vmatprep.subr.bf16.mxu1 %v3646_v55  ;;  %v1308_v55 = vsel %vm1276_vm1, %v3717_v54, 0 }
  0x7b   : > { %1355 = vmatmul.mubr.bf16.vlgmr.msra.gmra.mrb[0].mxu0 %v4241_v34 }
  0x7c   : > { %1405 = vmatpush1.bf16.msra.mxu0 %v3586_v36  ;;  %3280 = vmatprep.mubr.msk.bf16.mxu0 %vm1272_vm0, %v4233_v12  ;;  %v3688_v36 = vld [vmem:[#allocation3 + $0xa0] ss:$60 sps:$4 sm:$0xff]  }
  0x7d   : > { %1406 = vmatprep.subr.bf16.mxu0 %v3591_v37  ;;  %1382 = vmatpush1.bf16.msra.mxu1 %v3648_v58  ;;  %v3693_v37 = vld [vmem:[#allocation3 + $0x11c] ss:$60 sps:$4 sm:$0xff]   ;;  %v3719_v58 = vld [vmem:[#allocation3 + $0xb0] ss:$60 sps:$4 sm:$0xff]  }
  0x7e   : > { %3277 = vmatprep.subr.msk.bf16.mxu1 %vm1276_vm1, %v3649_v59  ;;  %v3720_v59 = vld [vmem:[#allocation3 + $0x128] ss:$60 sps:$4 sm:$0xff]  }
  0x80   : > { %1407 = vmatpush1.bf16.msra.mxu0 %v3589_v40  ;;  %v3694_v40 = vld [vmem:[#allocation3 + $0x190] ss:$60 sps:$4 sm:$0xff]  }
  0x81   : > { %1408 = vmatprep.subr.bf16.mxu0 %v3594_v41  ;;  %1384 = vmatpush1.bf16.msra.mxu1 %v1284_v63  ;;  %v3699_v41 = vld [vmem:[#allocation3 + $0x20c] ss:$60 sps:$4 sm:$0xff]  }
  0x82   : > { %1445 = vmatprep.subr.bf16.mxu1 %v3654_v0  ;;  %v3724_v63 = vld [vmem:[#allocation3 + $0x308] ss:$60 sps:$4 sm:$0xff]   ;;  %v3725_v0 = vld [vmem:[#allocation3 + $0x380] ss:$60 sps:$4 sm:$0xff]  }
  0x84   : > { %1409 = vmatpush1.bf16.msra.mxu0 %v3592_v44  ;;  %1396 = vmatmul.mubr.bf16.vlgmr.msra.gmra.mrb[0].mxu1 %v4241_v34  ;;  %v3700_v44 = vld [vmem:[#allocation3 + $0x280] ss:$60 sps:$4 sm:$0xff]  }
  0x85   : > { %1410 = vmatprep.subr.bf16.mxu0 %v3597_v45  ;;  %1446 = vmatpush1.bf16.msra.mxu1 %v3652_v3  ;;  %v3705_v45 = vld [vmem:[#allocation3 + $0x2fc] ss:$60 sps:$4 sm:$0xff]   ;;  %v3728_v3 = vld [vmem:[#allocation3 + $0x4e8] ss:$60 sps:$4 sm:$0x1f]  }
  0x86   : > { %3282 = vmatprep.mubr.msk.bf16.mxu1 %vm1272_vm0, %v4233_v12  ;;  %1447 = vmatprep.subr.bf16.mxu1 %v3657_v5  ;;  %v4070_v5 = vmov 0.0  }
  0x88   : > { %1411 = vmatpush1.bf16.msra.mxu0 %v3595_v48  ;;  %v3706_v48 = vld [vmem:[#allocation3 + $0x370] ss:$60 sps:$4 sm:$0xff]  }
  0x89   : > { %1412 = vmatprep.subr.bf16.mxu0 %v3600_v49  ;;  %1448 = vmatpush1.bf16.msra.mxu1 %v3655_v7  ;;  %v3711_v49 = vld [vmem:[#allocation3 + $0x3ec] ss:$60 sps:$4 sm:$0xff]  }
  0x8a   : > { %1449 = vmatprep.subr.bf16.mxu1 %v3660_v8 }
  0x8c   : > { %1413 = vmatpush1.bf16.msra.mxu0 %v3598_v52  ;;  %v3712_v52 = vld [vmem:[#allocation3 + $0x460] ss:$60 sps:$4 sm:$0xff]  }
  0x8d   : > { %1414 = vmatprep.subr.bf16.mxu0 %v3603_v53  ;;  %1450 = vmatpush1.bf16.msra.mxu1 %v3658_v13  ;;  %v3715_v53 = vld [vmem:[#allocation3 + $0x4dc] ss:$60 sps:$4 sm:$0x1f]  }
  0x8e   : > { %1451 = vmatprep.subr.bf16.mxu1 %v3663_v14 }
  0x90   : > { %1415 = vmatpush1.bf16.msra.mxu0 %v3601_v56  ;;  %v3718_v56 = vld [vmem:[#allocation3 + $0x38] ss:$60 sps:$4 sm:$0xff]  }
  0x91   : > { %1416 = vmatprep.subr.bf16.mxu0 %v3606_v57  ;;  %1452 = vmatpush1.bf16.msra.mxu1 %v3661_v15  ;;  %v4069_v57 = vmov 0  }
  0x92   : > { %1453 = vmatprep.subr.bf16.mxu1 %v3666_v17 }
  0x94   : > { %1417 = vmatpush1.bf16.msra.mxu0 %v3604_v61  ;;  %v3722_v61 = vld [vmem:[#allocation3 + $0x218] ss:$60 sps:$4 sm:$0xff]  }
  0x95   : > { %1418 = vmatprep.subr.bf16.mxu0 %v3609_v62  ;;  %1454 = vmatpush1.bf16.msra.mxu1 %v3664_v18  ;;  %v3723_v62 = vld [vmem:[#allocation3 + $0x290] ss:$60 sps:$4 sm:$0xff]  }
  0x96   : > { %1455 = vmatprep.subr.bf16.mxu1 %v3669_v19 }
  0x98   : > { %1419 = vmatpush1.bf16.msra.mxu0 %v3607_v1  ;;  %v3726_v1 = vld [vmem:[#allocation3 + $0x3f8] ss:$60 sps:$4 sm:$0xff]  }
  0x99   : > { %1420 = vmatprep.subr.bf16.mxu0 %v3612_v2  ;;  %1456 = vmatpush1.bf16.msra.mxu1 %v3667_v20  ;;  %v3727_v2 = vld [vmem:[#allocation3 + $0x470] ss:$60 sps:$4 sm:$0xff]  }
  0x9a   : > { %1457 = vmatprep.subr.bf16.mxu1 %v3672_v21 }
  0x9c   : > { %1421 = vmatpush1.bf16.msra.mxu0 %v3610_v4  ;;  %v1320_v4 = vsel %vm1276_vm1, %v3728_v3, 0 }
  0x9d   : > { %1422 = vmatprep.subr.bf16.mxu0 %v3615_v6  ;;  %1458 = vmatpush1.bf16.msra.mxu1 %v3670_v22  ;;  %v1719_v22 = vlaneseq }
  0x9e   : > { %1459 = vmatprep.subr.bf16.mxu1 %v3675_v23 }
  0x9f   : > { %v1720_v23 = vand.u32 127, %v1719_v22 }
  0xa0   : > { %1423 = vmatpush1.bf16.msra.mxu0 %v3613_v9 }
  0xa1   : > { %3279 = vmatprep.subr.msk.bf16.mxu0 %vm1276_vm1, %v3616_v10  ;;  %1460 = vmatpush1.bf16.msra.mxu1 %v3673_v24  ;;  %vm1721_vm3 = vcmp.eq.s32.totalorder %v1720_v23, 34  ;;  %v3756_v23 = vld [vmem:[#allocation3 + $0x98] ss:$60 sps:$4 sm:$0xff]  }
  0xa2   : > { %1461 = vmatprep.subr.bf16.mxu1 %v3678_v25  ;;  %vm4284_vm4 = vmpackc.low %vm1721_vm3, %vm1721_vm3 }
  0xa4   : > { %1425 = vmatpush1.bf16.msra.mxu0 %v1290_v16 }
  0xa5   : > { %1462 = vmatpush1.bf16.msra.mxu1 %v3676_v26 }
  0xa6   : > { %1463 = vmatprep.subr.bf16.mxu1 %v3681_v27 }
  0xa7   : > { %1437 = vmatmul.mubr.bf16.vlgmr.msra.gmra.mrb[4].mxu0 %v4241_v34 }
  0xa8   : > { %3284 = vmatprep.mubr.msk.bf16.mxu0 %vm1272_vm0, %v4233_v12 }
  0xa9   : > { %1464 = vmatpush1.bf16.msra.mxu1 %v3679_v28 }
  0xaa   : > { %3281 = vmatprep.subr.msk.bf16.mxu1 %vm1276_vm1, %v3682_v29 }
  0xad   : > { %1466 = vmatpush1.bf16.msra.mxu1 %v1296_v32 }
  0xae   : > { %1527 = vmatprep.subr.bf16.mxu1 %v3687_v31 }
  0xb0   : > { %1478 = vmatmul.mubr.bf16.vlgmr.msra.gmra.mrb[4].mxu1 %v4241_v34 }
  0xb1   : > { %1528 = vmatpush1.bf16.msra.mxu1 %v3685_v33  ;;  %3286 = vmatprep.mubr.msk.bf16.mxu1 %vm1272_vm0, %v4233_v12 }
  0xb2   : > { %1529 = vmatprep.subr.bf16.mxu1 %v3690_v35 }
  0xb5   : > { %1530 = vmatpush1.bf16.msra.mxu1 %v3688_v36 }
  0xb6   : > { %1531 = vmatprep.subr.bf16.mxu1 %v3693_v37 }
  0xb9   : > { %1532 = vmatpush1.bf16.msra.mxu1 %v3691_v38 }
  0xba   : > { %1533 = vmatprep.subr.bf16.mxu1 %v3696_v39 }
  0xbd   : > { %1534 = vmatpush1.bf16.msra.mxu1 %v3694_v40 }
  0xbe   : > { %1535 = vmatprep.subr.bf16.mxu1 %v3699_v41 }
  0xc1   : > { %1536 = vmatpush1.bf16.msra.mxu1 %v3697_v42 }
  0xc2   : > { %1537 = vmatprep.subr.bf16.mxu1 %v3702_v43 }
  0xc5   : > { %1538 = vmatpush1.bf16.msra.mxu1 %v3700_v44 }
  0xc6   : > { %1539 = vmatprep.subr.bf16.mxu1 %v3705_v45 }
  0xc9   : > { %1540 = vmatpush1.bf16.msra.mxu1 %v3703_v46 }
  0xca   : > { %1541 = vmatprep.subr.bf16.mxu1 %v3708_v47 }
  0xcd   : > { %1542 = vmatpush1.bf16.msra.mxu1 %v3706_v48 }
  0xce   : > { %1543 = vmatprep.subr.bf16.mxu1 %v3711_v49 }
  0xd1   : > { %1544 = vmatpush1.bf16.msra.mxu1 %v3709_v50 }
  0xd2   : > { %1545 = vmatprep.subr.bf16.mxu1 %v3714_v51 }
  0xd5   : > { %1546 = vmatpush1.bf16.msra.mxu1 %v3712_v52 }
  0xd6   : > { %3285 = vmatprep.subr.msk.bf16.mxu1 %vm1276_vm1, %v3715_v53 }
  0xd9   : > { %1548 = vmatpush1.bf16.msra.mxu1 %v1308_v55 }
  0xda   : > { %1609 = vmatprep.subr.bf16.mxu1 %v4069_v57 }
  0xdc   : > { %1560 = vmatmul.mubr.bf16.vlgmr.msra.gmra.mrb[8].mxu1 %v4241_v34 }
  0xdd   : > { %1610 = vmatpush1.bf16.msra.mxu1 %v3718_v56  ;;  %3289 = vmatprep.mubr.msk.bf16.mxu1 %vm1272_vm0, %v4233_v12 }
  0xde   : > { %1611 = vmatprep.subr.bf16.mxu1 %v4069_v57 }
  0xe1   : > { %1612 = vmatpush1.bf16.msra.mxu1 %v3719_v58 }
  0xe2   : > { %1613 = vmatprep.subr.bf16.mxu1 %v4069_v57 }
  0xe5   : > { %1614 = vmatpush1.bf16.msra.mxu1 %v3720_v59 }
  0xe6   : > { %1615 = vmatprep.subr.bf16.mxu1 %v4069_v57 }
  0xe9   : > { %1616 = vmatpush1.bf16.msra.mxu1 %v3721_v60 }
  0xea   : > { %1617 = vmatprep.subr.bf16.mxu1 %v4069_v57 }
  0xed   : > { %1618 = vmatpush1.bf16.msra.mxu1 %v3722_v61 }
  0xee   : > { %1619 = vmatprep.subr.bf16.mxu1 %v4069_v57 }
  0xf1   : > { %1620 = vmatpush1.bf16.msra.mxu1 %v3723_v62 }
  0xf2   : > { %1621 = vmatprep.subr.bf16.mxu1 %v4069_v57 }
  0xf5   : > { %1622 = vmatpush1.bf16.msra.mxu1 %v3724_v63 }
  0xf6   : > { %1623 = vmatprep.subr.bf16.mxu1 %v4069_v57 }
  0xf9   : > { %1624 = vmatpush1.bf16.msra.mxu1 %v3725_v0 }
  0xfa   : > { %1625 = vmatprep.subr.bf16.mxu1 %v4069_v57 }
  0xfd   : > { %1626 = vmatpush1.bf16.msra.mxu1 %v3726_v1 }
  0xfe   : > { %1627 = vmatprep.subr.bf16.mxu1 %v4069_v57 }
 0x101   : > { %1628 = vmatpush1.bf16.msra.mxu1 %v3727_v2 }
 0x102   : > { %1629 = vmatprep.subr.bf16.mxu1 %v4069_v57 }
 0x105   : > { %1630 = vmatpush1.bf16.msra.mxu1 %v1320_v4 }
 0x106   : > { %3420 = vmatprep.subr.bf16.mxu1 %v4070_v5 }
 0x108   : > { %1642 = vmatmul.mubr.bf16.vlgmr.msra.gmra.mrb[12].mxu1 %v4241_v34 }
 0x109   : > { %3422 = vmatprep.mubr.msk.bf16.mxu1 %vm4071_vm2, %v4070_v5 }
 0x14e   : > { %v1356_v6 = vpop.f32.mrb[0].mxu0 }
 0x14f   : > { %v1358_v7 = vpop.f32.mrb[1].mxu0 }
 0x150   : > { %v3392_v8 = vpack.c.bf16 %v1358_v7, %v1356_v6  ;;  %v1360_v9 = vpop.f32.mrb[2].mxu0 }
 0x151   : > { %v1361_v10 = vpop.f32.mrb[3].mxu0 }
 0x152   : > { %1710 = vst [vmem:[#allocation2] sm:$0xff] %v3392_v8 }
 0x157   : > { %v1397_v11 = vpop.f32.mrb[0].mxu1 }
 0x158   : > { %v1399_v13 = vpop.f32.mrb[1].mxu1 }
 0x159   : > { %v3393_v14 = vpack.c.bf16 %v1399_v13, %v1397_v11  ;;  %v1401_v15 = vpop.f32.mrb[2].mxu1  ;;  %v1725_v25 = vld [vmem:[#allocation2] sm:$0xf]  ;;  %v1848_v62 = vld [vmem:[#allocation2 + $0x4] sm:$0xf] }
 0x15a   : > { %v1402_v16 = vpop.f32.mrb[3].mxu1  ;;  %v1729_v27 = vsel %vm4284_vm4, 1065369472, %v1725_v25  ;;  %v1851_v0 = vsel %vm4284_vm4, 1065369472, %v1848_v62 }
 0x15b   : > { %1711 = vst [vmem:[#allocation2 + $0x8] sm:$0xff] %v3393_v14  ;;  %v3759_v25 = vld [vmem:[#allocation3 + $0x110] ss:$60 sps:$4 sm:$0xff]  }
 0x15c   : > { %v3810_v62 = vld [vmem:[#allocation3 + $0x3f0] ss:$60 sps:$4 sm:$0xff]  }
 0x17a   : > { %v1438_v17 = vpop.f32.mrb[4].mxu0 }
 0x17b   : > { %v1440_v18 = vpop.f32.mrb[5].mxu0 }
 0x17c   : > { %v3394_v19 = vpack.c.bf16 %v1440_v18, %v1438_v17  ;;  %v1442_v20 = vpop.f32.mrb[6].mxu0  ;;  %v3731_v18 = vld [vmem:[#allocation6 + $0x4] ss:$8 sps:$4 sm:$0xff]  }
 0x17d   : > { %v1443_v21 = vpop.f32.mrb[7].mxu0  ;;  %v3755_v20 = vld [vmem:[#allocation3 + $0x24] ss:$60 sps:$4 sm:$0xff]  }
 0x17e   : > { %1712 = vst [vmem:[#allocation2 + $0x10] sm:$0xff] %v3394_v19  ;;  %v3753_v19 = vld [vmem:[#allocation3 + $0x20] ss:$60 sps:$4 sm:$0xff]   ;;  %1486 = vmatprep.subr.bf16.mxu0 %v3755_v20 }
 0x17f   : > { %v3758_v21 = vld [vmem:[#allocation3 + $0x9c] ss:$60 sps:$4 sm:$0xff]   ;;  %1487 = vmatpush1.bf16.msra.mxu0 %v3753_v19  ;;  %v3825_v19 = vld [vmem:[#allocation6 + $0xa0] ss:$8 sps:$4 sm:$0xff]  }
 0x180   : > { %1488 = vmatprep.subr.bf16.mxu0 %v3758_v21  ;;  %v3732_v20 = vld [vmem:[#allocation6 + $0x10] ss:$8 sps:$4 sm:$0xff]   ;;  %v3737_v21 = vld [vmem:[#allocation6 + $0x24] ss:$8 sps:$4 sm:$0xff]  }
 0x183   : > { %v1479_v28 = vpop.f32.mrb[4].mxu1  ;;  %1489 = vmatpush1.bf16.msra.mxu0 %v3756_v23  ;;  %v3833_v23 = vld [vmem:[#allocation6 + $0xc4] ss:$8 sps:$4 sm:$0xff]  }
 0x184   : > { %v1481_v29 = vpop.f32.mrb[5].mxu1 }
 0x185   : > { %v1726_v24 = vld [vmem:[#allocation2 + $0x14] sm:$0xf]  ;;  %v3395_v30 = vpack.c.bf16 %v1481_v29, %v1479_v28  ;;  %v1483_v31 = vpop.f32.mrb[6].mxu1  ;;  %v3762_v28 = vld [vmem:[#allocation3 + $0x188] ss:$60 sps:$4 sm:$0xff]  }
 0x186   : > { %3421 = vmatpush3.bf16.xpose.msra.mxu1 %v1726_v24  ;;  %v1484_v32 = vpop.f32.mrb[7].mxu1  ;;  %v3761_v24 = vld [vmem:[#allocation3 + $0x114] ss:$60 sps:$4 sm:$0xff]   ;;  %v3767_v29 = vld [vmem:[#allocation3 + $0x204] ss:$60 sps:$4 sm:$0xff]  }
 0x187   : > { %3426 = vmatprep.subr.bf16.mxu1 %v4070_v5  ;;  %1713 = vst [vmem:[#allocation2 + $0x18] sm:$0xff] %v3395_v30  ;;  %1490 = vmatprep.subr.bf16.mxu0 %v3761_v24  ;;  %v3765_v30 = vld [vmem:[#allocation3 + $0x200] ss:$60 sps:$4 sm:$0xff]   ;;  %v3768_v32 = vld [vmem:[#allocation3 + $0x278] ss:$60 sps:$4 sm:$0xff]  }
 0x188   : > { %1491 = vmatpush1.bf16.msra.mxu0 %v3759_v25  ;;  %v3770_v31 = vld [vmem:[#allocation3 + $0x27c] ss:$60 sps:$4 sm:$0xff]   ;;  %v3735_v24 = vld [vmem:[#allocation6 + $0x20] ss:$8 sps:$4 sm:$0xff]  }
 0x189   : > { %v3740_v25 = vld [vmem:[#allocation6 + $0x34] ss:$8 sps:$4 sm:$0xff]  }
 0x18d   : > { %3423 = vmatmul.mubr.bf16.vlgmr.msra.gmra.mrb[16].mxu1 %v1729_v27  ;;  %v3764_v27 = vld [vmem:[#allocation3 + $0x18c] ss:$60 sps:$4 sm:$0xff]  }
 0x18e   : > { %3428 = vmatprep.mubr.msk.bf16.mxu1 %vm4071_vm2, %v4070_v5  ;;  %v1849_v61 = vld [vmem:[#allocation2 + $0x18] sm:$0xf]  ;;  %1492 = vmatprep.subr.bf16.mxu0 %v3764_v27  ;;  %v3831_v27 = vld [vmem:[#allocation6 + $0xc0] ss:$8 sps:$4 sm:$0xff]  }
 0x18f   : > { %1493 = vmatpush1.bf16.msra.mxu0 %v3762_v28  ;;  %v3836_v28 = vld [vmem:[#allocation6 + $0xd4] ss:$8 sps:$4 sm:$0xff]  }
 0x190   : > { %1494 = vmatprep.subr.bf16.mxu0 %v3767_v29  ;;  %v3738_v29 = vld [vmem:[#allocation6 + $0x30] ss:$8 sps:$4 sm:$0xff]  }
 0x193   : > { %1495 = vmatpush1.bf16.msra.mxu0 %v3765_v30  ;;  %v3743_v30 = vld [vmem:[#allocation6 + $0x44] ss:$8 sps:$4 sm:$0xff]  }
 0x194   : > { %1496 = vmatprep.subr.bf16.mxu0 %v3770_v31  ;;  %v3834_v31 = vld [vmem:[#allocation6 + $0xd0] ss:$8 sps:$4 sm:$0xff]  }
 0x197   : > { %1497 = vmatpush1.bf16.msra.mxu0 %v3768_v32  ;;  %v3839_v32 = vld [vmem:[#allocation6 + $0xe4] ss:$8 sps:$4 sm:$0xff]  }
 0x1af   : > { %v1561_v33 = vpop.f32.mrb[8].mxu1 }
 0x1b0   : > { %v1563_v35 = vpop.f32.mrb[9].mxu1 }
 0x1b1   : > { %v3397_v36 = vpack.c.bf16 %v1563_v35, %v1561_v33  ;;  %v1565_v37 = vpop.f32.mrb[10].mxu1  ;;  %v3773_v33 = vld [vmem:[#allocation3 + $0x2f4] ss:$60 sps:$4 sm:$0xff]  }
 0x1b2   : > { %v1566_v38 = vpop.f32.mrb[11].mxu1  ;;  %v3771_v35 = vld [vmem:[#allocation3 + $0x2f0] ss:$60 sps:$4 sm:$0xff]   ;;  %1498 = vmatprep.subr.bf16.mxu0 %v3773_v33  ;;  %v3774_v37 = vld [vmem:[#allocation3 + $0x368] ss:$60 sps:$4 sm:$0xff]  }
 0x1b3   : > { %1715 = vst [vmem:[#allocation2 + $0x28] sm:$0xff] %v3397_v36  ;;  %v3776_v36 = vld [vmem:[#allocation3 + $0x36c] ss:$60 sps:$4 sm:$0xff]   ;;  %1499 = vmatpush1.bf16.msra.mxu0 %v3771_v35  ;;  %v3779_v38 = vld [vmem:[#allocation3 + $0x3e4] ss:$60 sps:$4 sm:$0xff]  }
 0x1b4   : > { %1500 = vmatprep.subr.bf16.mxu0 %v3776_v36  ;;  %v3741_v33 = vld [vmem:[#allocation6 + $0x40] ss:$8 sps:$4 sm:$0xff]   ;;  %v3746_v35 = vld [vmem:[#allocation6 + $0x54] ss:$8 sps:$4 sm:$0xff]  }
 0x1b5   : > { %v3837_v36 = vld [vmem:[#allocation6 + $0xe0] ss:$8 sps:$4 sm:$0xff]  }
 0x1b7   : > { %1501 = vmatpush1.bf16.msra.mxu0 %v3774_v37  ;;  %v3842_v37 = vld [vmem:[#allocation6 + $0xf4] ss:$8 sps:$4 sm:$0xff]  }
 0x1b8   : > { %1502 = vmatprep.subr.bf16.mxu0 %v3779_v38  ;;  %v3744_v38 = vld [vmem:[#allocation6 + $0x50] ss:$8 sps:$4 sm:$0xff]  }
 0x1ba   : > { %v1727_v39 = vld [vmem:[#allocation2 + $0x28] sm:$0xf]  ;;  %v1850_v63 = vld [vmem:[#allocation2 + $0x2c] sm:$0xf] }
 0x1bb   : > { %v1789_v40 = vsel %vm1787_vm5, %v1727_v39, 0  ;;  %v1910_v1 = vsel %vm1787_vm5, %v1850_v63, 0  ;;  %v3777_v39 = vld [vmem:[#allocation3 + $0x3e0] ss:$60 sps:$4 sm:$0xff]   ;;  %v3815_v63 = vld [vmem:[#allocation3 + $0x46c] ss:$60 sps:$4 sm:$0xff]  }
 0x1bc   : > { %3427 = vmatpush3.bf16.msra.mxu1 %v1789_v40  ;;  %v3782_v40 = vld [vmem:[#allocation3 + $0x45c] ss:$60 sps:$4 sm:$0xff]   ;;  %1503 = vmatpush1.bf16.msra.mxu0 %v3777_v39  ;;  %v3749_v39 = vld [vmem:[#allocation6 + $0x64] ss:$8 sps:$4 sm:$0xff]  }
 0x1bd   : > { %3432 = vmatprep.subr.bf16.mxu1 %v4070_v5  ;;  %1504 = vmatprep.subr.bf16.mxu0 %v3782_v40  ;;  %v3840_v40 = vld [vmem:[#allocation6 + $0xf0] ss:$8 sps:$4 sm:$0xff]  }
 0x1db   : > { %v1643_v41 = vpop.f32.mrb[12].mxu1 }
 0x1dc   : > { %v3399_v42 = vpack.c.bf16 %v1643_v41, %v1643_v41  ;;  %v1645_v43 = vpop.f32.mrb[13].mxu1  ;;  %v3780_v41 = vld [vmem:[#allocation3 + $0x458] ss:$60 sps:$4 sm:$0xff]  }
 0x1dd   : > { %v1646_v44 = vpop.f32.mrb[14].mxu1  ;;  %v3785_v43 = vld [vmem:[#allocation3 + $0x4d0] ss:$60 sps:$4 sm:$0x1f]   ;;  %1505 = vmatpush1.bf16.msra.mxu0 %v3780_v41 }
 0x1de   : > { %1717 = vst [vmem:[#allocation2 + $0x38] sm:$0xf] %v3399_v42  ;;  %v1647_v45 = vpop.f32.mrb[15].mxu1  ;;  %v3783_v42 = vld [vmem:[#allocation3 + $0x4d4] ss:$60 sps:$4 sm:$0x1f]  }
 0x1df   : > { %3283 = vmatprep.subr.msk.bf16.mxu0 %vm1276_vm1, %v3783_v42  ;;  %v1302_v44 = vsel %vm1276_vm1, %v3785_v43, 0  ;;  %v3788_v45 = vld [vmem:[#allocation3 + $0x34] ss:$60 sps:$4 sm:$0xff]   ;;  %v3752_v42 = vld [vmem:[#allocation6 + $0x74] ss:$8 sps:$4 sm:$0xff]  }
 0x1e0   : > { %v3747_v41 = vld [vmem:[#allocation6 + $0x60] ss:$8 sps:$4 sm:$0xff]   ;;  %v3750_v43 = vld [vmem:[#allocation6 + $0x70] ss:$8 sps:$4 sm:$0xff]  }
 0x1e1   : > { %1507 = vmatpush1.bf16.msra.mxu0 %v1302_v44 }
 0x1e2   : > { %1568 = vmatprep.subr.bf16.mxu0 %v3788_v45 }
 0x1e4   : > { %1519 = vmatmul.mubr.bf16.vlgmr.msra.gmra.mrb[8].mxu0 %v4241_v34 }
 0x1e5   : > { %3288 = vmatprep.mubr.msk.bf16.mxu0 %vm1272_vm0, %v4233_v12  ;;  %v3804_v12 = vld [vmem:[#allocation3 + $0x300] ss:$60 sps:$4 sm:$0xff]  }
 0x260   : > { %v1764_v46 = vpop.f32.mrb[16].mxu1 }
 0x261   : > { %v3424_v47 = vpop.f32.mrb[17].mxu1  ;;  %v1771_v48 = vsel %vm1770_vm6, %v1764_v46, -inf }
 0x262   : > { %1772 = vmax.xlane.f32.xlu0 %v1771_v48  ;;  %v1767_v49 = vpop.f32.mrb[18].mxu1  ;;  %v3791_v47 = vld [vmem:[#allocation3 + $0xac] ss:$60 sps:$4 sm:$0xff]  }
 0x263   : > { %v3425_v50 = vpop.f32.mrb[19].mxu1  ;;  %v3789_v48 = vld [vmem:[#allocation3 + $0xa8] ss:$60 sps:$4 sm:$0xff]  }
 0x264   : > { %v3794_v49 = vld [vmem:[#allocation3 + $0x124] ss:$60 sps:$4 sm:$0xff]  }
 0x265   : > { %v3792_v50 = vld [vmem:[#allocation3 + $0x120] ss:$60 sps:$4 sm:$0xff]  }
 0x2b7   : > { %v1520_v45 = vpop.f32.mrb[8].mxu0 }
 0x2ef   : > { %v1773_v51 = vpop.xlane.xlu0 %1772 }
 0x2f0   : > { %v1774_v52 = vsub.f32 %v1764_v46, %v1773_v51  ;;  %v3786_v46 = vld [vmem:[#allocation3 + $0x30] ss:$60 sps:$4 sm:$0xff]   ;;  %v3797_v51 = vld [vmem:[#allocation3 + $0x19c] ss:$60 sps:$4 sm:$0xff]  }
 0x2f1   : > { %1569 = vmatpush1.bf16.msra.mxu0 %v3786_v46  ;;  %v1522_v46 = vpop.f32.mrb[9].mxu0 }
 0x2f2   : > { %v1775_v53 = vmul.f32 1.442695, %v1774_v52  ;;  %1570 = vmatprep.subr.bf16.mxu0 %v3791_v47  ;;  %v3795_v52 = vld [vmem:[#allocation3 + $0x198] ss:$60 sps:$4 sm:$0xff]   ;;  %v3396_v47 = vpack.c.bf16 %v1522_v46, %v1520_v45  ;;  %v2457_v46 = vld [vmem:[#allocation2 + $0xc] sm:$0xf] }
 0x2f4   : > { %3915 = vpow2.f32 %v1775_v53  ;;  %v3800_v53 = vld [vmem:[#allocation3 + $0x214] ss:$60 sps:$4 sm:$0xff]   ;;  %1714 = vst [vmem:[#allocation2 + $0x20] sm:$0xff] %v3396_v47 }
 0x2f5   : > { %1571 = vmatpush1.bf16.msra.mxu0 %v3789_v48  ;;  %v1524_v48 = vpop.f32.mrb[10].mxu0 }
 0x2f6   : > { %1572 = vmatprep.subr.bf16.mxu0 %v3794_v49  ;;  %v1525_v49 = vpop.f32.mrb[11].mxu0  ;;  %v2460_v48 = vsel %vm4284_vm4, 1065369472, %v2457_v46 }
 0x2f9   : > { %1573 = vmatpush1.bf16.msra.mxu0 %v3792_v50 }
 0x2fa   : > { %1574 = vmatprep.subr.bf16.mxu0 %v3797_v51 }
 0x2fb   : > { %v2458_v45 = vld [vmem:[#allocation2 + $0x20] sm:$0xf] }
 0x2fd   : > { %1575 = vmatpush1.bf16.msra.mxu0 %v3795_v52 }
 0x2fe   : > { %v3916_v54 = vpop.eup %3915  ;;  %1576 = vmatprep.subr.bf16.mxu0 %v3800_v53 }
 0x2ff   : > { %v1777_v55 = vsel %vm1770_vm6, %v3916_v54, 0.0 }
 0x300   : > { %1778 = vadd.xlane.f32.xlu0 %v1777_v55  ;;  %v3803_v55 = vld [vmem:[#allocation3 + $0x28c] ss:$60 sps:$4 sm:$0xff]  }
 0x38d   : > { %v1779_v56 = vpop.xlane.xlu0 %1778 }
 0x38e   : > { %3917 = vrcp.f32 %v1779_v56  ;;  %v3801_v56 = vld [vmem:[#allocation3 + $0x288] ss:$60 sps:$4 sm:$0xff]  }
 0x398   : > { %v3918_v58 = vpop.eup %3917 }
 0x399   : > { %v1781_v59 = vmul.f32 %v3918_v58, %v3916_v54  ;;  %v3798_v54 = vld [vmem:[#allocation3 + $0x210] ss:$60 sps:$4 sm:$0xff]   ;;  %v3806_v58 = vld [vmem:[#allocation3 + $0x304] ss:$60 sps:$4 sm:$0xff]  }
 0x39a   : > { %1577 = vmatpush1.bf16.msra.mxu0 %v3798_v54 }
 0x39b   : > { %1782 = vst.msk [vmem:[%s4299_s14] sm:$0xff] %vm1770_vm6, %v1781_v59  ;;  %v1783_v60 = vpack.c.bf16 %v1781_v59, %v1781_v59  ;;  %1578 = vmatprep.subr.bf16.mxu0 %v3803_v55  ;;  %v3809_v59 = vld [vmem:[#allocation3 + $0x37c] ss:$60 sps:$4 sm:$0xff]  }
 0x39d   : > { %3429 = vmatmul.mubr.msk.bf16.vlgmr.msra.gmra.mrb[20].mxu1 %vm1770_vm6, %v1783_v60  ;;  %v3807_v60 = vld [vmem:[#allocation3 + $0x378] ss:$60 sps:$4 sm:$0xff]  }
 0x39e   : > { %3433 = vmatpush3.bf16.xpose.msra.mxu1 %v1849_v61  ;;  %3434 = vmatprep.mubr.msk.bf16.mxu1 %vm4071_vm2, %v4070_v5  ;;  %v3812_v61 = vld [vmem:[#allocation3 + $0x3f4] ss:$60 sps:$4 sm:$0xff]  }
 0x39f   : > { %3438 = vmatprep.subr.bf16.mxu1 %v4070_v5  ;;  %1579 = vmatpush1.bf16.msra.mxu0 %v3801_v56 }
 0x3a0   : > { %1580 = vmatprep.subr.bf16.mxu0 %v3806_v58 }
 0x3a3   : > { %1581 = vmatpush1.bf16.msra.mxu0 %v3804_v12 }
 0x3a4   : > { %1582 = vmatprep.subr.bf16.mxu0 %v3809_v59  ;;  %v2213_v59 = vld [vmem:[#allocation2 + $0x1c] sm:$0xf] }
 0x3a5   : > { %3435 = vmatmul.mubr.bf16.vlgmr.msra.gmra.mrb[24].mxu1 %v1851_v0  ;;  %v3813_v0 = vld [vmem:[#allocation3 + $0x468] ss:$60 sps:$4 sm:$0xff]  }
 0x3a6   : > { %3439 = vmatpush3.bf16.msra.mxu1 %v1910_v1  ;;  %3440 = vmatprep.mubr.msk.bf16.mxu1 %vm4071_vm2, %v4070_v5 }
 0x3a7   : > { %2171 = vmatprep.subr.bf16.mxu1 %v3731_v18  ;;  %1583 = vmatpush1.bf16.msra.mxu0 %v3807_v60  ;;  %v3734_v18 = vld [vmem:[#allocation6 + $0x14] ss:$8 sps:$4 sm:$0xff]  }
 0x3a8   : > { %1584 = vmatprep.subr.bf16.mxu0 %v3812_v61 }
 0x3ab   : > { %1585 = vmatpush1.bf16.msra.mxu0 %v3810_v62  ;;  %v2212_v62 = vld [vmem:[#allocation2 + $0x8] sm:$0xf] }
 0x3ac   : > { %1586 = vmatprep.subr.bf16.mxu0 %v3815_v63  ;;  %v2215_v63 = vsel %vm4284_vm4, 1065369472, %v2212_v62 }
 0x3af   : > { %1587 = vmatpush1.bf16.msra.mxu0 %v3813_v0 }
 0x470   : > { %v4312_v2 = vpop.f32.mrb[20].mxu1 }
 0x471   : > { %v3430_v3 = vpop.f32.mrb[21].mxu1  ;;  %v1831_v44 = vpack.c.bf16 %v4312_v2, %v4312_v2 }
 0x472   : > { %v1828_v4 = vpop.f32.mrb[22].mxu1  ;;  %v3816_v3 = vld [vmem:[#allocation3 + $0x4e4] ss:$60 sps:$4 sm:$0x1f]  }
 0x473   : > { %v3431_v6 = vpop.f32.mrb[23].mxu1  ;;  %v3818_v4 = vld [vmem:[#allocation3 + $0x4e0] ss:$60 sps:$4 sm:$0x1f]   ;;  %3287 = vmatprep.subr.msk.bf16.mxu0 %vm1276_vm1, %v3816_v3 }
 0x474   : > { %v1314_v6 = vsel %vm1276_vm1, %v3818_v4, 0 }
 0x475   : > { %1589 = vmatpush1.bf16.msra.mxu0 %v1314_v6 }
 0x478   : > { %v1886_v7 = vpop.f32.mrb[24].mxu1  ;;  %1601 = vmatmul.mubr.bf16.vlgmr.msra.gmra.mrb[12].mxu0 %v4241_v34  ;;  %v3830_v34 = vld [vmem:[#allocation6 + $0xb4] ss:$8 sps:$4 sm:$0xff]  }
 0x479   : > { %v3436_v8 = vpop.f32.mrb[25].mxu1  ;;  %v1892_v9 = vsel %vm1770_vm6, %v1886_v7, -inf  ;;  %2082 = vmatprep.mubr.bf16.mxu0 %v4069_v57 }
 0x47a   : > { %1893 = vmax.xlane.f32.xlu1 %v1892_v9  ;;  %v1889_v10 = vpop.f32.mrb[26].mxu1  ;;  %v3819_v8 = vld [vmem:[#allocation6 + $0x80] ss:$8 sps:$4 sm:$0xff]   ;;  %v3824_v9 = vld [vmem:[#allocation6 + $0x94] ss:$8 sps:$4 sm:$0xff]  }
 0x47b   : > { %v3437_v11 = vpop.f32.mrb[27].mxu1 }
 0x47c   : > { %v3822_v11 = vld [vmem:[#allocation6 + $0x90] ss:$8 sps:$4 sm:$0xff]  }
 0x507   : > { %v1894_v13 = vpop.xlane.xlu1 %1893 }
 0x508   : > { %v1895_v14 = vsub.f32 %v1886_v7, %v1894_v13  ;;  %v3821_v7 = vld [vmem:[#allocation6 + $0x84] ss:$8 sps:$4 sm:$0xff]  }
 0x509   : > { %2050 = vmatprep.subr.bf16.mxu0 %v3821_v7 }
 0x50a   : > { %v1896_v15 = vmul.f32 1.442695, %v1895_v14  ;;  %2051 = vmatpush1.bf16.msra.mxu0 %v3819_v8  ;;  %v3827_v14 = vld [vmem:[#allocation6 + $0xa4] ss:$8 sps:$4 sm:$0xff]  }
 0x50b   : > { %2052 = vmatprep.subr.bf16.mxu0 %v3824_v9 }
 0x50c   : > { %3919 = vpow2.f32 %v1896_v15  ;;  %v3729_v15 = vld [vmem:[#allocation6] ss:$8 sps:$4 sm:$0xff]  }
 0x50e   : > { %2053 = vmatpush1.bf16.msra.mxu0 %v3822_v11 }
 0x50f   : > { %2054 = vmatprep.subr.bf16.mxu0 %v3827_v14 }
 0x512   : > { %2055 = vmatpush1.bf16.msra.mxu0 %v3825_v19 }
 0x513   : > { %2056 = vmatprep.subr.bf16.mxu0 %v3830_v34 }
 0x516   : > { %v4315_v16 = vpop.eup %3919 }
 0x517   : > { %v1898_v17 = vsel %vm1770_vm6, %v4315_v16, 0.0 }
 0x518   : > { %1899 = vadd.xlane.f32.xlu1 %v1898_v17 }
 0x54b   : > { %v1602_v50 = vpop.f32.mrb[12].mxu0 }
 0x54c   : > { %v1604_v51 = vpop.f32.mrb[13].mxu0 }
 0x54d   : > { %v3398_v52 = vpack.c.bf16 %v1604_v51, %v1602_v50  ;;  %v1606_v53 = vpop.f32.mrb[14].mxu0 }
 0x54e   : > { %v1607_v54 = vpop.f32.mrb[15].mxu0 }
 0x54f   : > { %1716 = vst [vmem:[#allocation2 + $0x30] sm:$0xff] %v3398_v52 }
 0x556   : > { %v2214_v60 = vld [vmem:[#allocation2 + $0x30] sm:$0xf]  ;;  %v2459_v47 = vld [vmem:[#allocation2 + $0x34] sm:$0xf] }
 0x557   : > { %v2274_v61 = vsel %vm1787_vm5, %v2214_v60, 0  ;;  %v2519_v49 = vsel %vm1787_vm5, %v2459_v47, 0 }
 0x5a5   : > { %v1900_v1 = vpop.xlane.xlu1 %1899 }
 0x5a6   : > { %3921 = vrcp.f32 %v1900_v1 }
 0x5b0   : > { %v3922_v10 = vpop.eup %3921 }
 0x5b1   : > { %v1902_v13 = vmul.f32 %v3922_v10, %v4315_v16  ;;  %v3828_v16 = vld [vmem:[#allocation6 + $0xb0] ss:$8 sps:$4 sm:$0xff]  }
 0x5b2   : > { %2057 = vmatpush1.bf16.msra.mxu0 %v3828_v16 }
 0x5b3   : > { %3299 = vst.msk [vmem:[%s4299_s14 + $0x8] sm:$0xff] %vm1770_vm6, %v1902_v13  ;;  %v1905_v17 = vpack.c.bf16 %v1902_v13, %v1902_v13  ;;  %2058 = vmatprep.subr.bf16.mxu0 %v3833_v23  ;;  %v3843_v23 = vld [vmem:[#allocation6 + $0x100] ss:$8 sps:$4 sm:$0xff]  }
 0x5b5   : > { %3441 = vmatmul.mubr.msk.bf16.vlgmr.msra.gmra.mrb[28].mxu1 %vm1770_vm6, %v1905_v17 }
 0x5b6   : > { %2172 = vmatpush1.bf16.msra.mxu1 %v3729_v15  ;;  %2203 = vmatprep.mubr.bf16.mxu1 %v4069_v57 }
 0x5b7   : > { %2173 = vmatprep.subr.bf16.mxu1 %v3734_v18  ;;  %2059 = vmatpush1.bf16.msra.mxu0 %v3831_v27  ;;  %v3846_v27 = vld [vmem:[#allocation6 + $0x110] ss:$8 sps:$4 sm:$0xff]  }
 0x5b8   : > { %2060 = vmatprep.subr.bf16.mxu0 %v3836_v28  ;;  %v3851_v28 = vld [vmem:[#allocation6 + $0x124] ss:$8 sps:$4 sm:$0xff]  }
 0x5ba   : > { %2174 = vmatpush1.bf16.msra.mxu1 %v3732_v20 }
 0x5bb   : > { %2175 = vmatprep.subr.bf16.mxu1 %v3737_v21  ;;  %2061 = vmatpush1.bf16.msra.mxu0 %v3834_v31  ;;  %v3852_v31 = vld [vmem:[#allocation6 + $0x130] ss:$8 sps:$4 sm:$0xff]  }
 0x5bc   : > { %2062 = vmatprep.subr.bf16.mxu0 %v3839_v32  ;;  %v3857_v32 = vld [vmem:[#allocation6 + $0x144] ss:$8 sps:$4 sm:$0xff]  }
 0x5be   : > { %2176 = vmatpush1.bf16.msra.mxu1 %v3735_v24  ;;  %v3845_v24 = vld [vmem:[#allocation6 + $0x104] ss:$8 sps:$4 sm:$0xff]  }
 0x5bf   : > { %2177 = vmatprep.subr.bf16.mxu1 %v3740_v25  ;;  %2063 = vmatpush1.bf16.msra.mxu0 %v3837_v36  ;;  %v3848_v25 = vld [vmem:[#allocation6 + $0x114] ss:$8 sps:$4 sm:$0xff]   ;;  %v3858_v36 = vld [vmem:[#allocation6 + $0x150] ss:$8 sps:$4 sm:$0xff]  }
 0x5c0   : > { %2064 = vmatprep.subr.bf16.mxu0 %v3842_v37  ;;  %v3863_v37 = vld [vmem:[#allocation6 + $0x164] ss:$8 sps:$4 sm:$0xff]  }
 0x5c2   : > { %2178 = vmatpush1.bf16.msra.mxu1 %v3738_v29  ;;  %v3849_v29 = vld [vmem:[#allocation6 + $0x120] ss:$8 sps:$4 sm:$0xff]  }
 0x5c3   : > { %2179 = vmatprep.subr.bf16.mxu1 %v3743_v30  ;;  %2065 = vmatpush1.bf16.msra.mxu0 %v3840_v40  ;;  %v3854_v30 = vld [vmem:[#allocation6 + $0x134] ss:$8 sps:$4 sm:$0xff]   ;;  %v3864_v40 = vld [vmem:[#allocation6 + $0x170] ss:$8 sps:$4 sm:$0xff]  }
 0x5c4   : > { %3444 = vmatprep.subr.bf16.mxu0 %v4070_v5 }
 0x5c6   : > { %2180 = vmatpush1.bf16.msra.mxu1 %v3741_v33  ;;  %v3855_v33 = vld [vmem:[#allocation6 + $0x140] ss:$8 sps:$4 sm:$0xff]  }
 0x5c7   : > { %2181 = vmatprep.subr.bf16.mxu1 %v3746_v35  ;;  %v3860_v35 = vld [vmem:[#allocation6 + $0x154] ss:$8 sps:$4 sm:$0xff]  }
 0x5ca   : > { %2182 = vmatpush1.bf16.msra.mxu1 %v3744_v38  ;;  %v3861_v38 = vld [vmem:[#allocation6 + $0x160] ss:$8 sps:$4 sm:$0xff]  }
 0x5cb   : > { %2183 = vmatprep.subr.bf16.mxu1 %v3749_v39  ;;  %v3866_v39 = vld [vmem:[#allocation6 + $0x174] ss:$8 sps:$4 sm:$0xff]  }
 0x5ce   : > { %2184 = vmatpush1.bf16.msra.mxu1 %v3747_v41 }
 0x5cf   : > { %2185 = vmatprep.subr.bf16.mxu1 %v3752_v42 }
 0x5d2   : > { %2186 = vmatpush1.bf16.msra.mxu1 %v3750_v43 }
 0x5d3   : > { %3450 = vmatprep.subr.bf16.mxu1 %v4070_v5 }
 0x5d5   : > { %2204 = vmatmul.mubr.bf16.vlgmr.msra.gmra.mrb[32].mxu1 %v1831_v44 }
 0x5d6   : > { %3452 = vmatprep.mubr.msk.bf16.mxu1 %vm4071_vm2, %v4070_v5  ;;  %3451 = vmatpush3.bf16.msra.mxu1 %v2274_v61 }
 0x5d7   : > { %3456 = vmatprep.subr.bf16.mxu1 %v4070_v5 }
 0x688   : > { %v1946_v55 = vpop.f32.mrb[28].mxu1 }
 0x689   : > { %v1952_v2 = vpack.c.bf16 %v1946_v55, %v1946_v55  ;;  %v3442_v56 = vpop.f32.mrb[29].mxu1  ;;  %v2703_v55 = vld [vmem:[#allocation2 + $0x24] sm:$0xf] }
 0x68a   : > { %v1949_v58 = vpop.f32.mrb[30].mxu1 }
 0x68b   : > { %v3443_v12 = vpop.f32.mrb[31].mxu1  ;;  %2083 = vmatmul.mubr.bf16.vlgmr.msra.gmra.mrb[16].mxu0 %v1952_v2  ;;  %v2702_v2 = vld [vmem:[#allocation2 + $0x10] sm:$0xf]  ;;  %v2704_v58 = vld [vmem:[#allocation2 + $0x38] sm:$0xf] }
 0x68c   : > { %3445 = vmatpush3.bf16.xpose.msra.mxu0 %v2213_v59  ;;  %3446 = vmatprep.mubr.msk.bf16.mxu0 %vm4071_vm2, %v4070_v5  ;;  %v2705_v61 = vsel %vm4284_vm4, 1065369472, %v2702_v2  ;;  %v3894_v2 = vld [vmem:[#allocation6 + $0x210] ss:$8 sps:$4 sm:$0xff]  }
 0x68d   : > { %2414 = vmatprep.subr.bf16.mxu0 %v3845_v24  ;;  %v3870_v24 = vld [vmem:[#allocation6 + $0x190] ss:$8 sps:$4 sm:$0xff]  }
 0x693   : > { %3447 = vmatmul.mubr.bf16.vlgmr.msra.gmra.mrb[20].mxu0 %v2215_v63  ;;  %v2764_v63 = vsel %vm1787_vm5, %v2704_v58, 0  ;;  %v3897_v58 = vld [vmem:[#allocation6 + $0x220] ss:$8 sps:$4 sm:$0xff]  }
 0x694   : > { %2446 = vmatprep.mubr.bf16.mxu0 %v4069_v57  ;;  %2415 = vmatpush1.bf16.msra.mxu0 %v3843_v23  ;;  %v3872_v23 = vld [vmem:[#allocation6 + $0x194] ss:$8 sps:$4 sm:$0xff]  }
 0x695   : > { %2416 = vmatprep.subr.bf16.mxu0 %v3848_v25  ;;  %v3875_v25 = vld [vmem:[#allocation6 + $0x1a4] ss:$8 sps:$4 sm:$0xff]  }
 0x698   : > { %2417 = vmatpush1.bf16.msra.mxu0 %v3846_v27  ;;  %v3873_v27 = vld [vmem:[#allocation6 + $0x1a0] ss:$8 sps:$4 sm:$0xff]  }
 0x699   : > { %2418 = vmatprep.subr.bf16.mxu0 %v3851_v28  ;;  %v3878_v28 = vld [vmem:[#allocation6 + $0x1b4] ss:$8 sps:$4 sm:$0xff]  }
 0x69c   : > { %2419 = vmatpush1.bf16.msra.mxu0 %v3849_v29  ;;  %v3876_v29 = vld [vmem:[#allocation6 + $0x1b0] ss:$8 sps:$4 sm:$0xff]  }
 0x69d   : > { %2420 = vmatprep.subr.bf16.mxu0 %v3854_v30  ;;  %v3881_v30 = vld [vmem:[#allocation6 + $0x1c4] ss:$8 sps:$4 sm:$0xff]  }
 0x6a0   : > { %2421 = vmatpush1.bf16.msra.mxu0 %v3852_v31  ;;  %v3879_v31 = vld [vmem:[#allocation6 + $0x1c0] ss:$8 sps:$4 sm:$0xff]  }
 0x6a1   : > { %2422 = vmatprep.subr.bf16.mxu0 %v3857_v32 }
 0x6a4   : > { %2423 = vmatpush1.bf16.msra.mxu0 %v3855_v33 }
 0x6a5   : > { %2424 = vmatprep.subr.bf16.mxu0 %v3860_v35 }
 0x6a8   : > { %v2205_v0 = vpop.f32.mrb[32].mxu1  ;;  %2425 = vmatpush1.bf16.msra.mxu0 %v3858_v36 }
 0x6a9   : > { %v2207_v1 = vpop.f32.mrb[33].mxu1  ;;  %2426 = vmatprep.subr.bf16.mxu0 %v3863_v37 }
 0x6aa   : > { %v2209_v3 = vpop.f32.mrb[34].mxu1 }
 0x6ab   : > { %v2210_v4 = vpop.f32.mrb[35].mxu1 }
 0x6ac   : > { %2427 = vmatpush1.bf16.msra.mxu0 %v3861_v38  ;;  %v3884_v38 = vld [vmem:[#allocation6 + $0x1d4] ss:$8 sps:$4 sm:$0xff]  }
 0x6ad   : > { %2428 = vmatprep.subr.bf16.mxu0 %v3866_v39  ;;  %v3882_v39 = vld [vmem:[#allocation6 + $0x1d0] ss:$8 sps:$4 sm:$0xff]  }
 0x6b0   : > { %2429 = vmatpush1.bf16.msra.mxu0 %v3864_v40  ;;  %v3887_v40 = vld [vmem:[#allocation6 + $0x1e4] ss:$8 sps:$4 sm:$0xff]  }
 0x6b1   : > { %3468 = vmatprep.subr.bf16.mxu0 %v4070_v5 }
 0x75e   : > { %v2084_v6 = vpop.f32.mrb[16].mxu0 }
 0x75f   : > { %v4346_v7 = vadd.f32 %v2205_v0, %v2084_v6  ;;  %v2086_v8 = vpop.f32.mrb[17].mxu0 }
 0x760   : > { %v4348_v9 = vadd.f32 %v2207_v1, %v2086_v8  ;;  %v2088_v10 = vpop.f32.mrb[18].mxu0 }
 0x761   : > { %v2089_v11 = vpop.f32.mrb[19].mxu0 }
 0x766   : > { %v2250_v13 = vpop.f32.mrb[20].mxu0 }
 0x767   : > { %v3448_v14 = vpop.f32.mrb[21].mxu0  ;;  %v2256_v15 = vsel %vm1770_vm6, %v2250_v13, -inf }
 0x768   : > { %2257 = vmax.xlane.f32.xlu0 %v2256_v15  ;;  %v2253_v17 = vpop.f32.mrb[22].mxu0 }
 0x769   : > { %v3449_v18 = vpop.f32.mrb[23].mxu0 }
 0x7f5   : > { %v2258_v19 = vpop.xlane.xlu0 %2257 }
 0x7f6   : > { %v2259_v34 = vsub.f32 %v2250_v13, %v2258_v19 }
 0x7f8   : > { %v2260_v20 = vmul.f32 1.442695, %v2259_v34  ;;  %v3869_v34 = vld [vmem:[#allocation6 + $0x184] ss:$8 sps:$4 sm:$0xff]  }
 0x7fa   : > { %3923 = vpow2.f32 %v2260_v20 }
 0x804   : > { %v3924_v21 = vpop.eup %3923 }
 0x805   : > { %v2262_v16 = vsel %vm1770_vm6, %v3924_v21, 0.0 }
 0x806   : > { %2263 = vadd.xlane.f32.xlu1 %v2262_v16  ;;  %v3867_v16 = vld [vmem:[#allocation6 + $0x180] ss:$8 sps:$4 sm:$0xff]  }
 0x893   : > { %v2264_v41 = vpop.xlane.xlu1 %2263 }
 0x894   : > { %3925 = vrcp.f32 %v2264_v41  ;;  %v3885_v41 = vld [vmem:[#allocation6 + $0x1e0] ss:$8 sps:$4 sm:$0xff]  }
 0x89e   : > { %v3926_v42 = vpop.eup %3925 }
 0x89f   : > { %v2266_v43 = vmul.f32 %v3926_v42, %v3924_v21  ;;  %v3890_v42 = vld [vmem:[#allocation6 + $0x1f4] ss:$8 sps:$4 sm:$0xff]  }
 0x8a1   : > { %3333 = vst.msk [vmem:[%s4299_s14 + $0x10] sm:$0xff] %vm1770_vm6, %v2266_v43  ;;  %v2269_v44 = vpack.c.bf16 %v2266_v43, %v2266_v43  ;;  %v3888_v43 = vld [vmem:[#allocation6 + $0x1f0] ss:$8 sps:$4 sm:$0xff]  }
 0x8a3   : > { %3453 = vmatmul.mubr.msk.bf16.vlgmr.msra.gmra.mrb[36].mxu1 %vm1770_vm6, %v2269_v44  ;;  %v3893_v44 = vld [vmem:[#allocation6 + $0x204] ss:$8 sps:$4 sm:$0xff]  }
 0x8a4   : > { %3457 = vmatpush3.bf16.xpose.msra.mxu1 %v2458_v45  ;;  %3458 = vmatprep.mubr.msk.bf16.mxu1 %vm4071_vm2, %v4070_v5 }
 0x8a5   : > { %3462 = vmatprep.subr.bf16.mxu1 %v4070_v5 }
 0x8ab   : > { %3459 = vmatmul.mubr.bf16.vlgmr.msra.gmra.mrb[40].mxu1 %v2460_v48 }
 0x8ac   : > { %3463 = vmatpush3.bf16.msra.mxu1 %v2519_v49  ;;  %3464 = vmatprep.mubr.msk.bf16.mxu1 %vm4071_vm2, %v4070_v5  ;;  %v3891_v49 = vld [vmem:[#allocation6 + $0x200] ss:$8 sps:$4 sm:$0xff]  }
 0x8ad   : > { %2659 = vmatprep.subr.bf16.mxu1 %v3869_v34 }
 0x976   : > { %v2310_v50 = vpop.f32.mrb[36].mxu1 }
 0x977   : > { %v2316_v51 = vpack.c.bf16 %v2310_v50, %v2310_v50  ;;  %v3454_v52 = vpop.f32.mrb[37].mxu1 }
 0x978   : > { %v2313_v53 = vpop.f32.mrb[38].mxu1 }
 0x979   : > { %v3455_v54 = vpop.f32.mrb[39].mxu1  ;;  %2447 = vmatmul.mubr.bf16.vlgmr.msra.gmra.mrb[24].mxu0 %v2316_v51  ;;  %v3896_v53 = vld [vmem:[#allocation6 + $0x214] ss:$8 sps:$4 sm:$0xff]  }
 0x97a   : > { %3469 = vmatpush3.bf16.xpose.msra.mxu0 %v2703_v55  ;;  %3470 = vmatprep.mubr.msk.bf16.mxu0 %vm4071_vm2, %v4070_v5 }
 0x97b   : > { %3474 = vmatprep.subr.bf16.mxu0 %v4070_v5 }
 0x97e   : > { %v2495_v56 = vpop.f32.mrb[40].mxu1 }
 0x97f   : > { %v3460_v12 = vpop.f32.mrb[41].mxu1  ;;  %v2501_v59 = vsel %vm1770_vm6, %v2495_v56, -inf }
 0x980   : > { %2502 = vmax.xlane.f32.xlu0 %v2501_v59  ;;  %v2498_v60 = vpop.f32.mrb[42].mxu1  ;;  %v3902_v12 = vld [vmem:[#allocation6 + $0x234] ss:$8 sps:$4 sm:$0xff]   ;;  %v3900_v59 = vld [vmem:[#allocation6 + $0x230] ss:$8 sps:$4 sm:$0xff]  }
 0x981   : > { %v3461_v62 = vpop.f32.mrb[43].mxu1  ;;  %3471 = vmatmul.mubr.bf16.vlgmr.msra.gmra.mrb[28].mxu0 %v2705_v61  ;;  %v3905_v60 = vld [vmem:[#allocation6 + $0x244] ss:$8 sps:$4 sm:$0xff]   ;;  %v3903_v61 = vld [vmem:[#allocation6 + $0x240] ss:$8 sps:$4 sm:$0xff]  }
 0x982   : > { %3475 = vmatpush3.bf16.msra.mxu0 %v2764_v63  ;;  %3476 = vmatprep.mubr.msk.bf16.mxu0 %vm4071_vm2, %v4070_v5  ;;  %v3908_v62 = vld [vmem:[#allocation6 + $0x254] ss:$8 sps:$4 sm:$0xff]   ;;  %v3906_v63 = vld [vmem:[#allocation6 + $0x250] ss:$8 sps:$4 sm:$0xff]  }
 0x983   : > { %2904 = vmatprep.subr.bf16.mxu0 %v3893_v44 }
 0xa0d   : > { %v2503_v0 = vpop.xlane.xlu0 %2502 }
 0xa0e   : > { %v2504_v1 = vsub.f32 %v2495_v56, %v2503_v0  ;;  %v3899_v56 = vld [vmem:[#allocation6 + $0x224] ss:$8 sps:$4 sm:$0xff]  }
 0xa0f   : > { %v3911_v0 = vld [vmem:[#allocation6 + $0x264] ss:$8 sps:$4 sm:$0xff]  }
 0xa10   : > { %v2505_v3 = vmul.f32 1.442695, %v2504_v1  ;;  %v3914_v1 = vld [vmem:[#allocation6 + $0x274] ss:$8 sps:$4 sm:$0xff]  }
 0xa12   : > { %3927 = vpow2.f32 %v2505_v3  ;;  %v3912_v3 = vld [vmem:[#allocation6 + $0x270] ss:$8 sps:$4 sm:$0xff]  }
 0xa1c   : > { %v3928_v4 = vpop.eup %3927 }
 0xa1d   : > { %v2507_v6 = vsel %vm1770_vm6, %v3928_v4, 0.0 }
 0xa1e   : > { %2508 = vadd.xlane.f32.xlu0 %v2507_v6 }
 0xa4c   : > { %v2448_v8 = vpop.f32.mrb[24].mxu0 }
 0xa4d   : > { %v4375_v26 = vadd.f32 %v2448_v8, %v4346_v7  ;;  %v2450_v10 = vpop.f32.mrb[25].mxu0 }
 0xa4e   : > { %v4378_v11 = vadd.f32 %v2450_v10, %v4348_v9  ;;  %v2452_v13 = vpop.f32.mrb[26].mxu0 }
 0xa4f   : > { %v2453_v14 = vpop.f32.mrb[27].mxu0 }
 0xa54   : > { %v2740_v5 = vpop.f32.mrb[28].mxu0 }
 0xa55   : > { %v3472_v15 = vpop.f32.mrb[29].mxu0  ;;  %v2746_v17 = vsel %vm1770_vm6, %v2740_v5, -inf }
 0xa56   : > { %2747 = vmax.xlane.f32.xlu1 %v2746_v17  ;;  %v2743_v18 = vpop.f32.mrb[30].mxu0 }
 0xa57   : > { %v3473_v19 = vpop.f32.mrb[31].mxu0 }
 0xaab   : > { %v2509_v20 = vpop.xlane.xlu0 %2508 }
 0xaac   : > { %3929 = vrcp.f32 %v2509_v20 }
 0xab6   : > { %v3930_v7 = vpop.eup %3929 }
 0xab7   : > { %v2511_v21 = vmul.f32 %v3930_v7, %v3928_v4 }
 0xab9   : > { %3351 = vst.msk [vmem:[%s4299_s14 + $0x18] sm:$0xff] %vm1770_vm6, %v2511_v21  ;;  %v2514_v9 = vpack.c.bf16 %v2511_v21, %v2511_v21 }
 0xabb   : > { %3465 = vmatmul.mubr.msk.bf16.vlgmr.msra.gmra.mrb[44].mxu1 %vm1770_vm6, %v2514_v9 }
 0xabc   : > { %2660 = vmatpush1.bf16.msra.mxu1 %v3867_v16  ;;  %2691 = vmatprep.mubr.bf16.mxu1 %v4069_v57 }
 0xabd   : > { %2661 = vmatprep.subr.bf16.mxu1 %v3872_v23 }
 0xac0   : > { %2662 = vmatpush1.bf16.msra.mxu1 %v3870_v24 }
 0xac1   : > { %2663 = vmatprep.subr.bf16.mxu1 %v3875_v25 }
 0xac4   : > { %2664 = vmatpush1.bf16.msra.mxu1 %v3873_v27 }
 0xac5   : > { %2665 = vmatprep.subr.bf16.mxu1 %v3878_v28 }
 0xac8   : > { %2666 = vmatpush1.bf16.msra.mxu1 %v3876_v29 }
 0xac9   : > { %2667 = vmatprep.subr.bf16.mxu1 %v3881_v30 }
 0xacc   : > { %2668 = vmatpush1.bf16.msra.mxu1 %v3879_v31 }
 0xacd   : > { %2669 = vmatprep.subr.bf16.mxu1 %v3884_v38 }
 0xad0   : > { %2670 = vmatpush1.bf16.msra.mxu1 %v3882_v39 }
 0xad1   : > { %2671 = vmatprep.subr.bf16.mxu1 %v3887_v40 }
 0xad4   : > { %2672 = vmatpush1.bf16.msra.mxu1 %v3885_v41 }
 0xad5   : > { %2673 = vmatprep.subr.bf16.mxu1 %v3890_v42 }
 0xad8   : > { %2674 = vmatpush1.bf16.msra.mxu1 %v3888_v43 }
 0xae3   : > { %v2748_v32 = vpop.xlane.xlu1 %2747 }
 0xae4   : > { %v2749_v33 = vsub.f32 %v2740_v5, %v2748_v32 }
 0xae6   : > { %v2750_v35 = vmul.f32 1.442695, %v2749_v33 }
 0xae8   : > { %3931 = vpow2.f32 %v2750_v35 }
 0xaf2   : > { %v3932_v36 = vpop.eup %3931 }
 0xaf3   : > { %v2752_v37 = vsel %vm1770_vm6, %v3932_v36, 0.0 }
 0xaf4   : > { %2753 = vadd.xlane.f32.xlu1 %v2752_v37 }
 0xb81   : > { %v2754_v45 = vpop.xlane.xlu1 %2753 }
 0xb82   : > { %3933 = vrcp.f32 %v2754_v45 }
 0xb8c   : > { %v3934_v46 = vpop.eup %3933 }
 0xb8d   : > { %v2756_v47 = vmul.f32 %v3934_v46, %v3932_v36 }
 0xb8e   : > { %v2555_v48 = vpop.f32.mrb[44].mxu1 }
 0xb8f   : > { %3369 = vst.msk [vmem:[%s4299_s14 + $0x20] sm:$0xff] %vm1770_vm6, %v2756_v47  ;;  %v2561_v50 = vpack.c.bf16 %v2555_v48, %v2555_v48  ;;  %v3466_v51 = vpop.f32.mrb[45].mxu1  ;;  %v2759_v52 = vpack.c.bf16 %v2756_v47, %v2756_v47 }
 0xb90   : > { %v2558_v54 = vpop.f32.mrb[46].mxu1 }
 0xb91   : > { %v3467_v55 = vpop.f32.mrb[47].mxu1  ;;  %2692 = vmatmul.mubr.bf16.vlgmr.msra.gmra.mrb[48].mxu1 %v2561_v50  ;;  %3477 = vmatmul.mubr.msk.bf16.vlgmr.msra.gmra.mrb[32].mxu0 %vm1770_vm6, %v2759_v52 }
 0xb92   : > { %2905 = vmatpush1.bf16.msra.mxu0 %v3891_v49  ;;  %2936 = vmatprep.mubr.bf16.mxu0 %v4069_v57  ;;  %v3909_v57 = vld [vmem:[#allocation6 + $0x260] ss:$8 sps:$4 sm:$0xff]  }
 0xb93   : > { %2906 = vmatprep.subr.bf16.mxu0 %v3896_v53 }
 0xb96   : > { %2907 = vmatpush1.bf16.msra.mxu0 %v3894_v2 }
 0xb97   : > { %2908 = vmatprep.subr.bf16.mxu0 %v3899_v56 }
 0xb9a   : > { %2909 = vmatpush1.bf16.msra.mxu0 %v3897_v58 }
 0xb9b   : > { %2910 = vmatprep.subr.bf16.mxu0 %v3902_v12 }
 0xb9e   : > { %2911 = vmatpush1.bf16.msra.mxu0 %v3900_v59 }
 0xb9f   : > { %2912 = vmatprep.subr.bf16.mxu0 %v3905_v60 }
 0xba2   : > { %2913 = vmatpush1.bf16.msra.mxu0 %v3903_v61 }
 0xba3   : > { %2914 = vmatprep.subr.bf16.mxu0 %v3908_v62 }
 0xba6   : > { %2915 = vmatpush1.bf16.msra.mxu0 %v3906_v63 }
 0xba7   : > { %2916 = vmatprep.subr.bf16.mxu0 %v3911_v0 }
 0xbaa   : > { %2917 = vmatpush1.bf16.msra.mxu0 %v3909_v57 }
 0xbab   : > { %2918 = vmatprep.subr.bf16.mxu0 %v3914_v1 }
 0xbae   : > { %2919 = vmatpush1.bf16.msra.mxu0 %v3912_v3 }
 0xc64   : > { %v2693_v4 = vpop.f32.mrb[48].mxu1  ;;  %v2800_v6 = vpop.f32.mrb[32].mxu0 }
 0xc65   : > { %v2700_v8 = vadd.f32 %v2693_v4, %v4375_v26  ;;  %v2806_v10 = vpack.c.bf16 %v2800_v6, %v2800_v6  ;;  %v2695_v13 = vpop.f32.mrb[49].mxu1  ;;  %v3478_v14 = vpop.f32.mrb[33].mxu0 }
 0xc66   : > { %v2701_v5 = vadd.f32 %v2695_v13, %v4378_v11  ;;  %v2697_v15 = vpop.f32.mrb[50].mxu1  ;;  %v2803_v17 = vpop.f32.mrb[34].mxu0 }
 0xc67   : > { %v2698_v18 = vpop.f32.mrb[51].mxu1  ;;  %v3479_v19 = vpop.f32.mrb[35].mxu0  ;;  %2937 = vmatmul.mubr.bf16.vlgmr.msra.gmra.mrb[36].mxu0 %v2806_v10 }
 0xc68   : > { %4004 = shalt.err (!%p4001_p11)
}
 0xc69   : > { %s4005_s10 = scalar_lea.hbm %s4397_s23, 640  ;;  %s4009_s12 = scalar_lea.hbm %s4457_s5, 1280 }
 0xc6a   : > { %p4006_p13 = scmp.ne.s32.totalorder %s4397_s23, %s4005_s10  ;;  %p4010_p6 = scmp.lt.u32.totalorder %s4397_s23, %s4457_s5 }
 0xc6b   : > { %p4011_p9 = scmp.lt.u32.totalorder %s4009_s12, %s4005_s10  ;;  %p4013_p10 = scmp.lt.u32.totalorder %s4005_s10, %s4397_s23 }
 0xc6c   : > { %p4007_p0 = pnand %p4006_p13, %p4472_p1 }
 0xc6d   : > { %p4012_p12 = por %p4011_p9, %p4010_p6 }
 0xc6e   : > { %p4008_p5 = pneg %p4007_p0 }
 0xc6f   : > { %p4014_p2 = por %p4013_p10, %p4012_p12 }
 0xc71   : > { %p4015_p3 = pnand %p4014_p2, %p4008_p5 }
 0xc73   : > { %4018 = shalt.err (!%p4015_p3)
}
 0xc74   : > { %s4073_s15 = smov 128   ;;  %s4074_s17 = smov 8   ;;  %v2949_v26 = vshrl.u32 %v1719_v22, 7  ;;  %v1718_v34 = vld [vmem:[%s4455_s3] sm:$0x3] }
 0xc75   : > { %3490 = dma.vmem_to_hbm [thread:$0]  (%p4472_p1), %s4399_s16, 640, %s4397_s23, %s4403_s25, %s4073_s15, %s4073_s15, %s4074_s17  }
 0xc76   : > { %v2950_v11 = vsub.s32 0, %v2949_v26  ;;  %v2954_v20 = vsub.s32 1, %v2949_v26  ;;  %s3391_s22 = sshll.u32 %s4227_s30, 4 }
 0xc77   : > { %s265_s10 = scalar_lea.vmem %s4456_s4, %s3391_s22 }
 0xc78   : > { %v2951_v7 = vrot.slane %v1718_v34, %v2950_v11  ;;  %v2955_v16 = vrot.slane %v1718_v34, %v2954_v20 }
 0xd3a   : > { %v2938_v21 = vpop.f32.mrb[36].mxu0 }
 0xd3b   : > { %v2945_v9 = vadd.f32 %v2938_v21, %v2700_v8  ;;  %v2940_v23 = vpop.f32.mrb[37].mxu0 }
 0xd3c   : > { %v2946_v24 = vadd.f32 %v2940_v23, %v2701_v5  ;;  %v2942_v25 = vpop.f32.mrb[38].mxu0 }
 0xd3d   : > { %v2958_v27 = vadd.f32 %v2951_v7, %v2945_v9  ;;  %v2943_v22 = vpop.f32.mrb[39].mxu0 }
 0xd3e   : > { %v2959_v28 = vadd.f32 %v2955_v16, %v2946_v24 }
 0xd3f   : > { %2963 = vst [vmem:[%s265_s10] sm:$0xff] %v2958_v27 }
 0xd40   : > { %2964 = vst [vmem:[%s265_s10 + $0x8] sm:$0xff] %v2959_v28 }
 0xd41 PF: > { %p3507_p1 = scmp.ge.s32.totalorder %s4061_s21, 2  ;;  %s3010_s28 = sand.u32 1, %s4049_s18  }
 0xd42   : > { %p4473_p4 = scmp.ne.s32.totalorder %s4462_s29, 0  ;;  %s3011_s30 = scalar_lea.sflag [#allocation5], %s3010_s28 }
 0xd44   : > { %p3500_p7 = pnand %p3507_p1, %p4473_p4 }
 0xd46   : > { %4044 = dma.done.wait (!%p3500_p7), %s3011_s30, 640  }
 0xd47   : > { %4046 = vsyncadd (!%p3500_p7), %s3011_s30, 4294966656  ;;  %p18_p8 = scmp.ge.s32.totalorder %s4130_s24, 4   ;;  %s4474_s18 = smov %s4053_s19 }
 0xd48   : > { %s4475_s19 = smov %s4057_s20  ;;  %s4476_s20 = smov %s4141_s27 }
 0xd49   : > { %s4477_s21 = smov %s4130_s24  ;;  %20 = sbr.rel (!%p18_p8) target bundleno = 5 (0x5), region = 102 }
 0xd50   :  { %3016 = vsyncpa [#allocation4], 1 }
 0xd51   :  { %3018 = vsyncpa [#allocation4 + $0x1], 1 }
 0xd52   :  { %3019 = vsyncpa [#allocation7], 1 }
 0xd53   :  { %3020 = vsyncpa [#allocation5], 1 }
 0xd54   :  { %3022 = vsyncpa [#allocation5 + $0x1], 1 }

</bundles_post_ra>
